<compile_context>
chip_gen: v7x
topology: tpu7x:2x2x1
jax: 0.10.0
libtpu: 0.0.40
codegen_flags: <defaults>
</compile_context>

<pallas_src>
import functools

import jax
import jax.numpy as jnp
import numpy as np
from jax.experimental import pallas as pl
from jax.experimental.pallas import tpu as pltpu

_VMEM_LIMIT = 32 * 1024 * 1024  # safe scoped-VMEM limit on v5e / v6e / v7x


# ----------------------------------------------------------------------------
# Kernel 1: fused embedding statistics (masked MSE / cos sums + pair cosines).
# ----------------------------------------------------------------------------
def _emb_stats_kernel(x_ref, xprev_ref, y_ref, yprev_ref, mask_ref,
                      part_ref, dx_ref, dy_ref, *, n_sen):
    i = pl.program_id(0)
    x = x_ref[...].astype(jnp.float32)           # (TS, B, D)
    y = y_ref[...].astype(jnp.float32)
    xp0 = xprev_ref[...].astype(jnp.float32)     # (1, B, D): sentence i*TS-1 (or 0)
    yp0 = yprev_ref[...].astype(jnp.float32)
    ts, b, _ = x.shape

    # Global sentence index of every row of this tile; mask out the ragged tail.
    s_idx = jax.lax.broadcasted_iota(jnp.int32, (ts, b), 0) + i * ts
    in_bounds = s_idx < n_sen
    mask = jnp.where(in_bounds, mask_ref[...], 0.0)           # (TS, B)

    # ---- per-row self statistics (masked MSE + CosineEmbeddingLoss) ----
    diff = x - y
    sq = jnp.sum(diff * diff, axis=-1)                        # (TS, B)
    dot = jnp.sum(x * y, axis=-1)
    nx = jnp.sum(x * x, axis=-1)
    ny = jnp.sum(y * y, axis=-1)
    cos = dot / jnp.maximum(jnp.sqrt(nx * ny), 1e-8)

    # The explicit where() guards against NaN/Inf leaking out of garbage rows
    # in the ragged last tile (0 * NaN == NaN, where() is a true select).
    part_sq = jnp.sum(jnp.where(in_bounds, mask * sq, 0.0))
    part_cos = jnp.sum(jnp.where(in_bounds, mask * (1.0 - cos), 0.0))

    # Lane-dense packed partial sums: [0,0,0]=sum(mask*sq), [0,0,1]=sum(mask*(1-cos)).
    lane = jax.lax.broadcasted_iota(jnp.int32, (1, 8, 128), 2)
    sub = jax.lax.broadcasted_iota(jnp.int32, (1, 8, 128), 1)
    part_ref[...] = jnp.where((sub == 0) & (lane == 0), part_sq,
                    jnp.where((sub == 0) & (lane == 1), part_cos, 0.0))

    # ---- cosine similarity with the previous sentence (delta lists) ----
    # Output row s holds cos(emb[s-1], emb[s]); global row 0 is a dummy
    # (cos(emb[0], emb[0])) that the wrapper slices away.  Previous-row squared
    # norms are a shifted copy of nx/ny (tiny (TS,B) concat) instead of a fresh
    # full-tile multiply + reduce.
    if ts > 1:
        xprev = jnp.concatenate([xp0, x[:ts - 1]], axis=0)    # (TS, B, D)
        yprev = jnp.concatenate([yp0, y[:ts - 1]], axis=0)
        pnx = jnp.concatenate([jnp.sum(xp0 * xp0, axis=-1), nx[:ts - 1]], axis=0)
        pny = jnp.concatenate([jnp.sum(yp0 * yp0, axis=-1), ny[:ts - 1]], axis=0)
    else:
        xprev, yprev = xp0, yp0
        pnx = jnp.sum(xp0 * xp0, axis=-1)
        pny = jnp.sum(yp0 * yp0, axis=-1)
    pdx = jnp.sum(xprev * x, axis=-1)
    dx_ref[...] = pdx / jnp.maximum(jnp.sqrt(pnx * nx), 1e-6)   # CosineSimilarity eps
    pdy = jnp.sum(yprev * y, axis=-1)
    dy_ref[...] = pdy / jnp.maximum(jnp.sqrt(pny * ny), 1e-6)


def _emb_tile_sentences(s, b, d):
    # ~1 MiB (f32-equivalent) of embedding rows per tensor per buffer.  With two
    # input tensors double-buffered plus ~6 live f32 temporaries this stays well
    # under the 32 MiB scoped-VMEM budget on every generation, and 1 MiB blocks
    # already sit on the flat part of the measured HBM-utilisation curve; in
    # production (S*B*D*4 ~ a few MiB) the whole tensor fits in one tile anyway.
    ts = (1024 * 1024) // (b * d * 4)
    ts = max(8, (ts // 8) * 8)
    return s if ts >= s else ts


def emb_stats(x, y, mask_sb):
    s, b, d = x.shape
    ts = _emb_tile_sentences(s, b, d)
    g = pl.cdiv(s, ts)
    kernel = functools.partial(_emb_stats_kernel, n_sen=s)
    part, pair_x, pair_y = pl.pallas_call(
        kernel,
        grid=(g,),
        in_specs=[
            pl.BlockSpec((ts, b, d), lambda i: (i, 0, 0)),
            pl.BlockSpec((1, b, d), lambda i: (jnp.maximum(i * ts - 1, 0), 0, 0)),
            pl.BlockSpec((ts, b, d), lambda i: (i, 0, 0)),
            pl.BlockSpec((1, b, d), lambda i: (jnp.maximum(i * ts - 1, 0), 0, 0)),
            pl.BlockSpec((ts, b), lambda i: (i, 0)),
        ],
        out_specs=[
            pl.BlockSpec((1, 8, 128), lambda i: (i, 0, 0)),
            pl.BlockSpec((ts, b), lambda i: (i, 0)),
            pl.BlockSpec((ts, b), lambda i: (i, 0)),
        ],
        out_shape=[
            jax.ShapeDtypeStruct((g, 8, 128), jnp.float32),
            jax.ShapeDtypeStruct((s, b), jnp.float32),
            jax.ShapeDtypeStruct((s, b), jnp.float32),
        ],
        compiler_params=pltpu.CompilerParams(
            dimension_semantics=("parallel",),
            vmem_limit_bytes=_VMEM_LIMIT),
    )(x, x, y, y, mask_sb)
    return part, pair_x, pair_y


# ----------------------------------------------------------------------------
# Kernel 2: row-tiled cross-entropy (ignore_index = -100) with in-kernel
# masked partial reduction.
# ----------------------------------------------------------------------------
def _ce_kernel(logits_ref, labels_ref, part_ref, *, n_rows):
    i = pl.program_id(0)
    lg = logits_ref[...].astype(jnp.float32)                  # (TR, V)
    lab = labels_ref[...]                                     # (TR, 1) int32
    tr, _ = lg.shape

    row = jax.lax.broadcasted_iota(jnp.int32, (tr, 1), 0) + i * tr
    valid = (row < n_rows) & (lab != -100)                    # (TR, 1)

    m = jnp.max(lg, axis=-1, keepdims=True)
    lse = jnp.log(jnp.sum(jnp.exp(lg - m), axis=-1, keepdims=True)) + m
    col = jax.lax.broadcasted_iota(jnp.int32, lg.shape, 1)
    # Label gather via one-hot select (labels outside [0, V) other than -100
    # silently pick 0, matching the earlier implementation).
    picked = jnp.sum(jnp.where(col == lab, lg, 0.0), axis=-1, keepdims=True)

    nll_sum = jnp.sum(jnp.where(valid, lse - picked, 0.0))
    cnt_sum = jnp.sum(jnp.where(valid, 1.0, 0.0))

    lane = jax.lax.broadcasted_iota(jnp.int32, (1, 8, 128), 2)
    sub = jax.lax.broadcasted_iota(jnp.int32, (1, 8, 128), 1)
    part_ref[...] = jnp.where((sub == 0) & (lane == 0), nll_sum,
                    jnp.where((sub == 0) & (lane == 1), cnt_sum, 0.0))


def _ce_row_tile(n, v):
    # Keep the f32 working tile ~4 MiB so the upcast / exp / select intermediates
    # plus the double-buffered input fit scoped VMEM on all generations
    # (v7x: 64 MiB physical).  V=32k -> TR=32.
    tr = (4 * 1024 * 1024) // (v * 4)
    tr = max(8, (tr // 8) * 8)
    return n if tr >= n else tr


def cross_entropy_sums(logits2d, labels_col):
    n, v = logits2d.shape
    tr = _ce_row_tile(n, v)
    g = pl.cdiv(n, tr)
    kernel = functools.partial(_ce_kernel, n_rows=n)
    cost = pl.CostEstimate(
        flops=int(6 * n * v),                 # sub, exp-adjacent muls, compares, adds
        transcendentals=int(n * v),           # one exp per logit
        bytes_accessed=int(n * v * logits2d.dtype.itemsize + n * 4 + g * 8 * 128 * 4))
    part = pl.pallas_call(
        kernel,
        grid=(g,),
        in_specs=[pl.BlockSpec((tr, v), lambda i: (i, 0)),
                  pl.BlockSpec((tr, 1), lambda i: (i, 0))],
        out_specs=pl.BlockSpec((1, 8, 128), lambda i: (i, 0, 0)),
        out_shape=jax.ShapeDtypeStruct((g, 8, 128), jnp.float32),
        compiler_params=pltpu.CompilerParams(
            dimension_semantics=("parallel",),
            vmem_limit_bytes=_VMEM_LIMIT),
        cost_estimate=cost,
    )(logits2d, labels_col)
    return jnp.sum(part[:, 0, 0]), jnp.sum(part[:, 0, 1])


# ----------------------------------------------------------------------------
# Forward pass of SenEmbedding_Loss.
# ----------------------------------------------------------------------------
def sen_embedding_loss(outputs_senemb, logits, labels_senembeddings, labels,
                       lambda1=1.0, lambda2=1.0, lambda3=1.0,
                       lambda4=1.0, lambda5=1.0):
    S, B, D = outputs_senemb.shape
    V = logits.shape[-1]

    # Unpadding mask.  The PyTorch helper builds the mask in (B, S) order and
    # then .view()s it as (S, B, D); reshaping the (B, S) validity to (S, B)
    # reproduces that quirk exactly.
    valid = (labels != 0) & (labels != 1)                     # (B, S) bool
    mask_sb = valid.reshape(S, B).astype(jnp.float32)         # (S, B)
    cnt = jnp.sum(mask_sb)

    part, pair_x, pair_y = emb_stats(outputs_senemb, labels_senembeddings, mask_sb)
    sum_sq = jnp.sum(part[:, 0, 0])
    sum_1mcos = jnp.sum(part[:, 0, 1])

    # NOTE: like the PyTorch reference, an all-padding batch (cnt == 0) yields
    # NaN here (MSE of an empty masked_select), so no extra guard is added.
    loss_mse = jnp.sqrt(sum_sq / (cnt * D) + 1e-6)
    loss_cos = sum_1mcos / cnt

    # ---- delta list: cosine similarity of consecutive sentences ----
    # pair_x[s] = cos(emb[s-1], emb[s]); drop the dummy row 0 and flatten in the
    # batch-major order the PyTorch loops append in.
    d_out = jnp.transpose(pair_x[1:, :]).reshape(-1)          # (B*(S-1),)
    d_gold = jnp.transpose(pair_y[1:, :]).reshape(-1)
    pair_valid = (valid[:, :-1] & valid[:, 1:]).reshape(-1)   # (B*(S-1),) bool
    pm = pair_valid.astype(jnp.float32)
    pcnt = jnp.sum(pm)

    loss_delta = jnp.where(
        pcnt > 0,
        jnp.sum(jnp.where(pair_valid, (d_out - d_gold) ** 2, 0.0))
        / jnp.maximum(pcnt, 1.0),
        jnp.float32(0.0))

    # ---- delta of delta: operates on the *compacted* flat delta list ----
    # TODO(synk): the dynamic-length masked_select / Python loops of the
    # reference are emulated with a stable argsort compaction in XLA (tiny
    # B*(S-1) arrays); the reference also does this in float64, which TPUs lack.
    order = jnp.argsort(jnp.logical_not(pair_valid), stable=True)
    comp_out = d_out[order]
    comp_gold = d_gold[order]

    def delta_of_delta(comp):
        cur, nxt = comp[:-1], comp[1:]
        denom = jnp.where(cur != 0, cur, jnp.float32(1e-6))
        return (nxt - cur) / denom / 100.0

    dd_out = delta_of_delta(comp_out)
    dd_gold = delta_of_delta(comp_gold)
    n_dd = jnp.maximum(pcnt - 1.0, 0.0)
    dd_valid = jnp.arange(dd_out.shape[0], dtype=jnp.float32) < n_dd
    loss_dd = jnp.where(
        n_dd > 0,
        jnp.sum(jnp.where(dd_valid, (dd_out - dd_gold) ** 2, 0.0))
        / jnp.maximum(n_dd, 1.0),
        jnp.float32(0.0))

    # ---- cross entropy over the vocabulary (ignore_index = -100) ----
    nll_sum, ce_cnt = cross_entropy_sums(logits.reshape(-1, V),
                                         labels.reshape(-1, 1).astype(jnp.int32))
    loss_ce = nll_sum / ce_cnt

    t1 = lambda1 * loss_mse
    t2 = lambda2 * loss_cos
    t3 = lambda3 * loss_delta
    t4 = lambda4 * loss_dd
    t5 = lambda5 * loss_ce
    return t1, t2, t3, t4, t5, t1 + t2 + t3 + t4 + t5


# ----------------------------------------------------------------------------
# Pure-JAX reference (same math, no Pallas) used as a runtime self-check.
# ----------------------------------------------------------------------------
def _reference(outputs_senemb, logits, labels_senembeddings, labels):
    S, B, D = outputs_senemb.shape
    V = logits.shape[-1]
    x = outputs_senemb.astype(jnp.float32)
    y = labels_senembeddings.astype(jnp.float32)
    valid = (labels != 0) & (labels != 1)
    mask_sb = valid.reshape(S, B).astype(jnp.float32)
    cnt = jnp.sum(mask_sb)

    sq = jnp.sum((x - y) ** 2, -1)
    dot = jnp.sum(x * y, -1)
    nx = jnp.sum(x * x, -1)
    ny = jnp.sum(y * y, -1)
    cos = dot / jnp.maximum(jnp.sqrt(nx * ny), 1e-8)
    loss_mse = jnp.sqrt(jnp.sum(mask_sb * sq) / (cnt * D) + 1e-6)
    loss_cos = jnp.sum(mask_sb * (1.0 - cos)) / cnt

    def pair_cos(e):
        a, b = e[:-1], e[1:]
        return jnp.sum(a * b, -1) / jnp.maximum(
            jnp.sqrt(jnp.sum(a * a, -1) * jnp.sum(b * b, -1)), 1e-6)

    d_out = jnp.transpose(pair_cos(x)).reshape(-1)
    d_gold = jnp.transpose(pair_cos(y)).reshape(-1)
    pair_valid = (valid[:, :-1] & valid[:, 1:]).reshape(-1)
    pcnt = jnp.sum(pair_valid.astype(jnp.float32))
    loss_delta = jnp.where(
        pcnt > 0,
        jnp.sum(jnp.where(pair_valid, (d_out - d_gold) ** 2, 0.0))
        / jnp.maximum(pcnt, 1.0), 0.0)

    order = jnp.argsort(jnp.logical_not(pair_valid), stable=True)
    co, cg = d_out[order], d_gold[order]

    def dd(comp):
        cur, nxt = comp[:-1], comp[1:]
        return (nxt - cur) / jnp.where(cur != 0, cur, 1e-6) / 100.0

    n_dd = jnp.maximum(pcnt - 1.0, 0.0)
    m_dd = jnp.arange(co.shape[0] - 1, dtype=jnp.float32) < n_dd
    loss_dd = jnp.where(
        n_dd > 0,
        jnp.sum(jnp.where(m_dd, (dd(co) - dd(cg)) ** 2, 0.0))
        / jnp.maximum(n_dd, 1.0), 0.0)

    lg = logits.reshape(-1, V).astype(jnp.float32)
    lab = labels.reshape(-1)
    m = jnp.max(lg, -1, keepdims=True)
    lse = (jnp.log(jnp.sum(jnp.exp(lg - m), -1, keepdims=True)) + m)[:, 0]
    picked = jnp.take_along_axis(lg, jnp.clip(lab, 0, V - 1)[:, None], axis=1)[:, 0]
    ce_valid = lab != -100
    loss_ce = jnp.sum(jnp.where(ce_valid, lse - picked, 0.0)) / jnp.sum(ce_valid)

    total = loss_mse + loss_cos + loss_delta + loss_dd + loss_ce
    return loss_mse, loss_cos, loss_delta, loss_dd, loss_ce, total


if __name__ == "__main__":
    key = jax.random.PRNGKey(0)
    S, B, D, V = 8, 2, 128, 256          # small shapes; production D=768, V~32k
    k1, k2, k3 = jax.random.split(key, 3)
    outputs_senemb = jax.random.normal(k1, (S, B, D), dtype=jnp.float32)
    labels_senembeddings = jax.random.normal(k2, (S, B, D), dtype=jnp.float32)
    logits = jax.random.normal(k3, (B, S, V), dtype=jnp.float32)
    # <SEN> token id = 5; padding positions are 0 / 1
    labels = jnp.array([[5, 5, 5, 5, 5, 0, 1, 1],
                        [5, 5, 5, 5, 0, 0, 1, 1]], dtype=jnp.int32)

    fn = jax.jit(sen_embedding_loss)
    out = jax.block_until_ready(
        fn(outputs_senemb, logits, labels_senembeddings, labels))
    ref = _reference(outputs_senemb, logits, labels_senembeddings, labels)
    np.testing.assert_allclose(np.array([float(v) for v in out]),
                               np.array([float(v) for v in ref]),
                               rtol=2e-2, atol=1e-4)
    print("KERNEL_OK")
</pallas_src>

<mosaic_0001>
module attributes {stable_mosaic.version = 11 : i64} {
  func.func @_emb_stats_kernel(%arg0: i32, %arg1: memref<8x2x128xf32, #tpu.memory_space<vmem>>, %arg2: memref<1x2x128xf32, #tpu.memory_space<vmem>>, %arg3: memref<8x2x128xf32, #tpu.memory_space<vmem>>, %arg4: memref<1x2x128xf32, #tpu.memory_space<vmem>>, %arg5: memref<8x2xf32, #tpu.memory_space<vmem>>, %arg6: memref<1x8x128xf32, #tpu.memory_space<vmem>>, %arg7: memref<8x2xf32, #tpu.memory_space<vmem>>, %arg8: memref<8x2xf32, #tpu.memory_space<vmem>>) attributes {dimension_semantics = [#tpu.dimension_semantics<parallel>], iteration_bounds = array<i64: 1>, scalar_prefetch = 0 : i64, scratch_operands = 0 : i64, tpu.core_type = #tpu.core_type<tc>, window_params = [{transform_indices = @transform_0, window_bounds = array<i64: 8, 2, 128>}, {transform_indices = @transform_1, window_bounds = array<i64: 1, 2, 128>}, {transform_indices = @transform_2, window_bounds = array<i64: 8, 2, 128>}, {transform_indices = @transform_3, window_bounds = array<i64: 1, 2, 128>}, {transform_indices = @transform_4, window_bounds = array<i64: 8, 2>}, {transform_indices = @transform_5, window_bounds = array<i64: 1, 8, 128>}, {transform_indices = @transform_6, window_bounds = array<i64: 8, 2>}, {transform_indices = @transform_7, window_bounds = array<i64: 8, 2>}]} {
    %c0 = arith.constant 0 : index
    %c0_0 = arith.constant 0 : index
    %c0_1 = arith.constant 0 : index
    %0 = vector.load %arg1[%c0, %c0_0, %c0_1] : memref<8x2x128xf32, #tpu.memory_space<vmem>>, vector<8x2x128xf32>
    %c0_2 = arith.constant 0 : index
    %c0_3 = arith.constant 0 : index
    %c0_4 = arith.constant 0 : index
    %1 = vector.load %arg3[%c0_2, %c0_3, %c0_4] : memref<8x2x128xf32, #tpu.memory_space<vmem>>, vector<8x2x128xf32>
    %c0_5 = arith.constant 0 : index
    %c0_6 = arith.constant 0 : index
    %c0_7 = arith.constant 0 : index
    %2 = vector.load %arg2[%c0_5, %c0_6, %c0_7] : memref<1x2x128xf32, #tpu.memory_space<vmem>>, vector<1x2x128xf32>
    %c0_8 = arith.constant 0 : index
    %c0_9 = arith.constant 0 : index
    %c0_10 = arith.constant 0 : index
    %3 = vector.load %arg4[%c0_8, %c0_9, %c0_10] : memref<1x2x128xf32, #tpu.memory_space<vmem>>, vector<1x2x128xf32>
    %4 = tpu.iota {dimensions = array<i32: 0>} : vector<8x2xi32>
    %c8_i32 = arith.constant 8 : i32
    %5 = arith.muli %arg0, %c8_i32 : i32
    %6 = vector.broadcast %5 : i32 to vector<8x2xi32>
    %7 = arith.addi %4, %6 : vector<8x2xi32>
    %c8_i32_11 = arith.constant 8 : i32
    %8 = vector.broadcast %c8_i32_11 : i32 to vector<8x2xi32>
    %9 = arith.cmpi slt, %7, %8 : vector<8x2xi32>
    %c0_12 = arith.constant 0 : index
    %c0_13 = arith.constant 0 : index
    %10 = vector.load %arg5[%c0_12, %c0_13] : memref<8x2xf32, #tpu.memory_space<vmem>>, vector<8x2xf32>
    %cst = arith.constant 0.000000e+00 : f32
    %11 = vector.broadcast %cst : f32 to vector<8x2xf32>
    %12 = arith.select %9, %10, %11 : vector<8x2xi1>, vector<8x2xf32>
    %13 = arith.subf %0, %1 : vector<8x2x128xf32>
    %14 = arith.mulf %13, %13 : vector<8x2x128xf32>
    %cst_14 = arith.constant dense<0.000000e+00> : vector<8x2xf32>
    %15 = vector.multi_reduction <add>, %14, %cst_14 [2] : vector<8x2x128xf32> to vector<8x2xf32>
    %16 = arith.mulf %0, %1 : vector<8x2x128xf32>
    %cst_15 = arith.constant dense<0.000000e+00> : vector<8x2xf32>
    %17 = vector.multi_reduction <add>, %16, %cst_15 [2] : vector<8x2x128xf32> to vector<8x2xf32>
    %18 = arith.mulf %0, %0 : vector<8x2x128xf32>
    %cst_16 = arith.constant dense<0.000000e+00> : vector<8x2xf32>
    %19 = vector.multi_reduction <add>, %18, %cst_16 [2] : vector<8x2x128xf32> to vector<8x2xf32>
    %20 = arith.mulf %1, %1 : vector<8x2x128xf32>
    %cst_17 = arith.constant dense<0.000000e+00> : vector<8x2xf32>
    %21 = vector.multi_reduction <add>, %20, %cst_17 [2] : vector<8x2x128xf32> to vector<8x2xf32>
    %22 = arith.mulf %19, %21 : vector<8x2xf32>
    %23 = math.sqrt %22 : vector<8x2xf32>
    %cst_18 = arith.constant 9.99999993E-9 : f32
    %24 = vector.broadcast %cst_18 : f32 to vector<8x2xf32>
    %25 = arith.maximumf %23, %24 : vector<8x2xf32>
    %26 = arith.divf %17, %25 : vector<8x2xf32>
    %27 = arith.mulf %12, %15 : vector<8x2xf32>
    %cst_19 = arith.constant 0.000000e+00 : f32
    %28 = vector.broadcast %cst_19 : f32 to vector<8x2xf32>
    %29 = arith.select %9, %27, %28 : vector<8x2xi1>, vector<8x2xf32>
    %30 = vector.shape_cast %29 : vector<8x2xf32> to vector<1x8x2xf32>
    %cst_20 = arith.constant dense<0.000000e+00> : vector<1xf32>
    %31 = vector.multi_reduction <add>, %30, %cst_20 [1, 2] : vector<1x8x2xf32> to vector<1xf32>
    %32 = vector.shape_cast %31 : vector<1xf32> to vector<1x1x1xf32>
    %33 = vector.extract %32[0, 0, 0] : f32 from vector<1x1x1xf32>
    %cst_21 = arith.constant 1.000000e+00 : f32
    %34 = vector.broadcast %cst_21 : f32 to vector<8x2xf32>
    %35 = arith.subf %34, %26 : vector<8x2xf32>
    %36 = arith.mulf %12, %35 : vector<8x2xf32>
    %cst_22 = arith.constant 0.000000e+00 : f32
    %37 = vector.broadcast %cst_22 : f32 to vector<8x2xf32>
    %38 = arith.select %9, %36, %37 : vector<8x2xi1>, vector<8x2xf32>
    %39 = vector.shape_cast %38 : vector<8x2xf32> to vector<1x8x2xf32>
    %cst_23 = arith.constant dense<0.000000e+00> : vector<1xf32>
    %40 = vector.multi_reduction <add>, %39, %cst_23 [1, 2] : vector<1x8x2xf32> to vector<1xf32>
    %41 = vector.shape_cast %40 : vector<1xf32> to vector<1x1x1xf32>
    %42 = vector.extract %41[0, 0, 0] : f32 from vector<1x1x1xf32>
    %43 = tpu.iota {dimensions = array<i32: 2>} : vector<1x8x128xi32>
    %44 = tpu.iota {dimensions = array<i32: 1>} : vector<1x8x128xi32>
    %c0_i32 = arith.constant 0 : i32
    %45 = vector.broadcast %c0_i32 : i32 to vector<1x8x128xi32>
    %46 = arith.cmpi eq, %44, %45 : vector<1x8x128xi32>
    %c0_i32_24 = arith.constant 0 : i32
    %47 = vector.broadcast %c0_i32_24 : i32 to vector<1x8x128xi32>
    %48 = arith.cmpi eq, %43, %47 : vector<1x8x128xi32>
    %49 = arith.andi %46, %48 : vector<1x8x128xi1>
    %c0_i32_25 = arith.constant 0 : i32
    %50 = vector.broadcast %c0_i32_25 : i32 to vector<1x8x128xi32>
    %51 = arith.cmpi eq, %44, %50 : vector<1x8x128xi32>
    %c1_i32 = arith.constant 1 : i32
    %52 = vector.broadcast %c1_i32 : i32 to vector<1x8x128xi32>
    %53 = arith.cmpi eq, %43, %52 : vector<1x8x128xi32>
    %54 = arith.andi %51, %53 : vector<1x8x128xi1>
    %cst_26 = arith.constant 0.000000e+00 : f32
    %55 = vector.broadcast %42 : f32 to vector<1x8x128xf32>
    %56 = vector.broadcast %cst_26 : f32 to vector<1x8x128xf32>
    %57 = arith.select %54, %55, %56 : vector<1x8x128xi1>, vector<1x8x128xf32>
    %58 = vector.broadcast %33 : f32 to vector<1x8x128xf32>
    %59 = arith.select %49, %58, %57 : vector<1x8x128xi1>, vector<1x8x128xf32>
    %c0_27 = arith.constant 0 : index
    %c0_28 = arith.constant 0 : index
    %c0_29 = arith.constant 0 : index
    %60 = vector.load %arg6[%c0_27, %c0_28, %c0_29] : memref<1x8x128xf32, #tpu.memory_space<vmem>>, vector<1x8x128xf32>
    tpu.vector_store %arg6[%c0_27, %c0_28, %c0_29], %59 {strides = array<i32>} : memref<1x8x128xf32, #tpu.memory_space<vmem>>, vector<1x8x128xf32>,
    %61 = vector.extract_strided_slice %0 {offsets = [0, 0, 0], sizes = [7, 2, 128], strides = [1, 1, 1]} : vector<8x2x128xf32> to vector<7x2x128xf32>
    %62 = tpu.concatenate %2, %61 in 0 : vector<1x2x128xf32>, vector<7x2x128xf32> -> vector<8x2x128xf32>
    %63 = vector.extract_strided_slice %1 {offsets = [0, 0, 0], sizes = [7, 2, 128], strides = [1, 1, 1]} : vector<8x2x128xf32> to vector<7x2x128xf32>
    %64 = tpu.concatenate %3, %63 in 0 : vector<1x2x128xf32>, vector<7x2x128xf32> -> vector<8x2x128xf32>
    %65 = arith.mulf %2, %2 : vector<1x2x128xf32>
    %cst_30 = arith.constant dense<0.000000e+00> : vector<1x2xf32>
    %66 = vector.multi_reduction <add>, %65, %cst_30 [2] : vector<1x2x128xf32> to vector<1x2xf32>
    %67 = vector.extract_strided_slice %19 {offsets = [0, 0], sizes = [7, 2], strides = [1, 1]} : vector<8x2xf32> to vector<7x2xf32>
    %68 = tpu.concatenate %66, %67 in 0 : vector<1x2xf32>, vector<7x2xf32> -> vector<8x2xf32>
    %69 = arith.mulf %3, %3 : vector<1x2x128xf32>
    %cst_31 = arith.constant dense<0.000000e+00> : vector<1x2xf32>
    %70 = vector.multi_reduction <add>, %69, %cst_31 [2] : vector<1x2x128xf32> to vector<1x2xf32>
    %71 = vector.extract_strided_slice %21 {offsets = [0, 0], sizes = [7, 2], strides = [1, 1]} : vector<8x2xf32> to vector<7x2xf32>
    %72 = tpu.concatenate %70, %71 in 0 : vector<1x2xf32>, vector<7x2xf32> -> vector<8x2xf32>
    %73 = arith.mulf %62, %0 : vector<8x2x128xf32>
    %cst_32 = arith.constant dense<0.000000e+00> : vector<8x2xf32>
    %74 = vector.multi_reduction <add>, %73, %cst_32 [2] : vector<8x2x128xf32> to vector<8x2xf32>
    %75 = arith.mulf %68, %19 : vector<8x2xf32>
    %76 = math.sqrt %75 : vector<8x2xf32>
    %cst_33 = arith.constant 9.99999997E-7 : f32
    %77 = vector.broadcast %cst_33 : f32 to vector<8x2xf32>
    %78 = arith.maximumf %76, %77 : vector<8x2xf32>
    %79 = arith.divf %74, %78 : vector<8x2xf32>
    %c0_34 = arith.constant 0 : index
    %c0_35 = arith.constant 0 : index
    %80 = vector.load %arg7[%c0_34, %c0_35] : memref<8x2xf32, #tpu.memory_space<vmem>>, vector<8x2xf32>
    tpu.vector_store %arg7[%c0_34, %c0_35], %79 {strides = array<i32>} : memref<8x2xf32, #tpu.memory_space<vmem>>, vector<8x2xf32>,
    %81 = arith.mulf %64, %1 : vector<8x2x128xf32>
    %cst_36 = arith.constant dense<0.000000e+00> : vector<8x2xf32>
    %82 = vector.multi_reduction <add>, %81, %cst_36 [2] : vector<8x2x128xf32> to vector<8x2xf32>
    %83 = arith.mulf %72, %21 : vector<8x2xf32>
    %84 = math.sqrt %83 : vector<8x2xf32>
    %cst_37 = arith.constant 9.99999997E-7 : f32
    %85 = vector.broadcast %cst_37 : f32 to vector<8x2xf32>
    %86 = arith.maximumf %84, %85 : vector<8x2xf32>
    %87 = arith.divf %82, %86 : vector<8x2xf32>
    %c0_38 = arith.constant 0 : index
    %c0_39 = arith.constant 0 : index
    %88 = vector.load %arg8[%c0_38, %c0_39] : memref<8x2xf32, #tpu.memory_space<vmem>>, vector<8x2xf32>
    tpu.vector_store %arg8[%c0_38, %c0_39], %87 {strides = array<i32>} : memref<8x2xf32, #tpu.memory_space<vmem>>, vector<8x2xf32>,
    return
  }
  func.func @transform_0(%arg0: i32) -> (i32, i32, i32) {
    %c0_i32 = arith.constant 0 : i32
    %c0_i32_0 = arith.constant 0 : i32
    %c0_i32_1 = arith.constant 0 : i32
    return %arg0, %c0_i32, %c0_i32_0 : i32, i32, i32
  }
  func.func @transform_1(%arg0: i32) -> (i32, i32, i32) {
    %c8_i32 = arith.constant 8 : i32
    %0 = arith.muli %arg0, %c8_i32 : i32
    %c1_i32 = arith.constant 1 : i32
    %1 = arith.subi %0, %c1_i32 : i32
    %c0_i32 = arith.constant 0 : i32
    %2 = arith.maxsi %1, %c0_i32 : i32
    %c0_i32_0 = arith.constant 0 : i32
    %c0_i32_1 = arith.constant 0 : i32
    %c0_i32_2 = arith.constant 0 : i32
    return %2, %c0_i32_0, %c0_i32_1 : i32, i32, i32
  }
  func.func @transform_2(%arg0: i32) -> (i32, i32, i32) {
    %c0_i32 = arith.constant 0 : i32
    %c0_i32_0 = arith.constant 0 : i32
    %c0_i32_1 = arith.constant 0 : i32
    return %arg0, %c0_i32, %c0_i32_0 : i32, i32, i32
  }
  func.func @transform_3(%arg0: i32) -> (i32, i32, i32) {
    %c8_i32 = arith.constant 8 : i32
    %0 = arith.muli %arg0, %c8_i32 : i32
    %c1_i32 = arith.constant 1 : i32
    %1 = arith.subi %0, %c1_i32 : i32
    %c0_i32 = arith.constant 0 : i32
    %2 = arith.maxsi %1, %c0_i32 : i32
    %c0_i32_0 = arith.constant 0 : i32
    %c0_i32_1 = arith.constant 0 : i32
    %c0_i32_2 = arith.constant 0 : i32
    return %2, %c0_i32_0, %c0_i32_1 : i32, i32, i32
  }
  func.func @transform_4(%arg0: i32) -> (i32, i32) {
    %c0_i32 = arith.constant 0 : i32
    %c0_i32_0 = arith.constant 0 : i32
    return %arg0, %c0_i32 : i32, i32
  }
  func.func @transform_5(%arg0: i32) -> (i32, i32, i32) {
    %c0_i32 = arith.constant 0 : i32
    %c0_i32_0 = arith.constant 0 : i32
    %c0_i32_1 = arith.constant 0 : i32
    return %arg0, %c0_i32, %c0_i32_0 : i32, i32, i32
  }
  func.func @transform_6(%arg0: i32) -> (i32, i32) {
    %c0_i32 = arith.constant 0 : i32
    %c0_i32_0 = arith.constant 0 : i32
    return %arg0, %c0_i32 : i32, i32
  }
  func.func @transform_7(%arg0: i32) -> (i32, i32) {
    %c0_i32 = arith.constant 0 : i32
    %c0_i32_0 = arith.constant 0 : i32
    return %arg0, %c0_i32 : i32, i32
  }
}

module attributes {stable_mosaic.version = 11 : i64} {
  func.func @_ce_kernel(%arg0: i32, %arg1: memref<16x256xf32, #tpu.memory_space<vmem>>, %arg2: memref<16x1xi32, #tpu.memory_space<vmem>>, %arg3: memref<1x8x128xf32, #tpu.memory_space<vmem>>) attributes {dimension_semantics = [#tpu.dimension_semantics<parallel>], iteration_bounds = array<i64: 1>, scalar_prefetch = 0 : i64, scratch_operands = 0 : i64, tpu.core_type = #tpu.core_type<tc>, window_params = [{transform_indices = @transform_0, window_bounds = array<i64: 16, 256>}, {transform_indices = @transform_1, window_bounds = array<i64: 16, 1>}, {transform_indices = @transform_2, window_bounds = array<i64: 1, 8, 128>}]} {
    %c0 = arith.constant 0 : index
    %c0_0 = arith.constant 0 : index
    %0 = vector.load %arg1[%c0, %c0_0] : memref<16x256xf32, #tpu.memory_space<vmem>>, vector<16x256xf32>
    %c0_1 = arith.constant 0 : index
    %c0_2 = arith.constant 0 : index
    %1 = vector.load %arg2[%c0_1, %c0_2] : memref<16x1xi32, #tpu.memory_space<vmem>>, vector<16x1xi32>
    %2 = tpu.iota {dimensions = array<i32: 0>} : vector<16x1xi32>
    %c16_i32 = arith.constant 16 : i32
    %3 = arith.muli %arg0, %c16_i32 : i32
    %4 = vector.broadcast %3 : i32 to vector<16x1xi32>
    %5 = arith.addi %2, %4 : vector<16x1xi32>
    %c16_i32_3 = arith.constant 16 : i32
    %6 = vector.broadcast %c16_i32_3 : i32 to vector<16x1xi32>
    %7 = arith.cmpi slt, %5, %6 : vector<16x1xi32>
    %c-100_i32 = arith.constant -100 : i32
    %8 = vector.broadcast %c-100_i32 : i32 to vector<16x1xi32>
    %9 = arith.cmpi ne, %1, %8 : vector<16x1xi32>
    %10 = arith.andi %7, %9 : vector<16x1xi1>
    %cst = arith.constant dense<0xFF800000> : vector<16xf32>
    %11 = vector.multi_reduction <maximumf>, %0, %cst [1] : vector<16x256xf32> to vector<16xf32>
    %12 = vector.shape_cast %11 : vector<16xf32> to vector<16x1xf32>
    %13 = vector.broadcast %12 : vector<16x1xf32> to vector<16x256xf32>
    %14 = arith.subf %0, %13 : vector<16x256xf32>
    %15 = math.exp %14 : vector<16x256xf32>
    %cst_4 = arith.constant dense<0.000000e+00> : vector<16xf32>
    %16 = vector.multi_reduction <add>, %15, %cst_4 [1] : vector<16x256xf32> to vector<16xf32>
    %17 = vector.shape_cast %16 : vector<16xf32> to vector<16x1xf32>
    %18 = math.log %17 : vector<16x1xf32>
    %19 = arith.addf %18, %12 : vector<16x1xf32>
    %20 = tpu.iota {dimensions = array<i32: 1>} : vector<16x256xi32>
    %21 = vector.broadcast %1 : vector<16x1xi32> to vector<16x256xi32>
    %22 = arith.cmpi eq, %20, %21 : vector<16x256xi32>
    %cst_5 = arith.constant 0.000000e+00 : f32
    %23 = vector.broadcast %cst_5 : f32 to vector<16x256xf32>
    %24 = arith.select %22, %0, %23 : vector<16x256xi1>, vector<16x256xf32>
    %cst_6 = arith.constant dense<0.000000e+00> : vector<16xf32>
    %25 = vector.multi_reduction <add>, %24, %cst_6 [1] : vector<16x256xf32> to vector<16xf32>
    %26 = vector.shape_cast %25 : vector<16xf32> to vector<16x1xf32>
    %27 = arith.subf %19, %26 : vector<16x1xf32>
    %cst_7 = arith.constant 0.000000e+00 : f32
    %28 = vector.broadcast %cst_7 : f32 to vector<16x1xf32>
    %29 = arith.select %10, %27, %28 : vector<16x1xi1>, vector<16x1xf32>
    %30 = vector.shape_cast %29 : vector<16x1xf32> to vector<1x16x1xf32>
    %cst_8 = arith.constant dense<0.000000e+00> : vector<1xf32>
    %31 = vector.multi_reduction <add>, %30, %cst_8 [1, 2] : vector<1x16x1xf32> to vector<1xf32>
    %32 = vector.shape_cast %31 : vector<1xf32> to vector<1x1x1xf32>
    %33 = vector.extract %32[0, 0, 0] : f32 from vector<1x1x1xf32>
    %cst_9 = arith.constant 1.000000e+00 : f32
    %cst_10 = arith.constant 0.000000e+00 : f32
    %34 = vector.broadcast %cst_9 : f32 to vector<16x1xf32>
    %35 = vector.broadcast %cst_10 : f32 to vector<16x1xf32>
    %36 = arith.select %10, %34, %35 : vector<16x1xi1>, vector<16x1xf32>
    %37 = vector.shape_cast %36 : vector<16x1xf32> to vector<1x16x1xf32>
    %cst_11 = arith.constant dense<0.000000e+00> : vector<1xf32>
    %38 = vector.multi_reduction <add>, %37, %cst_11 [1, 2] : vector<1x16x1xf32> to vector<1xf32>
    %39 = vector.shape_cast %38 : vector<1xf32> to vector<1x1x1xf32>
    %40 = vector.extract %39[0, 0, 0] : f32 from vector<1x1x1xf32>
    %41 = tpu.iota {dimensions = array<i32: 2>} : vector<1x8x128xi32>
    %42 = tpu.iota {dimensions = array<i32: 1>} : vector<1x8x128xi32>
    %c0_i32 = arith.constant 0 : i32
    %43 = vector.broadcast %c0_i32 : i32 to vector<1x8x128xi32>
    %44 = arith.cmpi eq, %42, %43 : vector<1x8x128xi32>
    %c0_i32_12 = arith.constant 0 : i32
    %45 = vector.broadcast %c0_i32_12 : i32 to vector<1x8x128xi32>
    %46 = arith.cmpi eq, %41, %45 : vector<1x8x128xi32>
    %47 = arith.andi %44, %46 : vector<1x8x128xi1>
    %c0_i32_13 = arith.constant 0 : i32
    %48 = vector.broadcast %c0_i32_13 : i32 to vector<1x8x128xi32>
    %49 = arith.cmpi eq, %42, %48 : vector<1x8x128xi32>
    %c1_i32 = arith.constant 1 : i32
    %50 = vector.broadcast %c1_i32 : i32 to vector<1x8x128xi32>
    %51 = arith.cmpi eq, %41, %50 : vector<1x8x128xi32>
    %52 = arith.andi %49, %51 : vector<1x8x128xi1>
    %cst_14 = arith.constant 0.000000e+00 : f32
    %53 = vector.broadcast %40 : f32 to vector<1x8x128xf32>
    %54 = vector.broadcast %cst_14 : f32 to vector<1x8x128xf32>
    %55 = arith.select %52, %53, %54 : vector<1x8x128xi1>, vector<1x8x128xf32>
    %56 = vector.broadcast %33 : f32 to vector<1x8x128xf32>
    %57 = arith.select %47, %56, %55 : vector<1x8x128xi1>, vector<1x8x128xf32>
    %c0_15 = arith.constant 0 : index
    %c0_16 = arith.constant 0 : index
    %c0_17 = arith.constant 0 : index
    %58 = vector.load %arg3[%c0_15, %c0_16, %c0_17] : memref<1x8x128xf32, #tpu.memory_space<vmem>>, vector<1x8x128xf32>
    tpu.vector_store %arg3[%c0_15, %c0_16, %c0_17], %57 {strides = array<i32>} : memref<1x8x128xf32, #tpu.memory_space<vmem>>, vector<1x8x128xf32>,
    return
  }
  func.func @transform_0(%arg0: i32) -> (i32, i32) {
    %c0_i32 = arith.constant 0 : i32
    %c0_i32_0 = arith.constant 0 : i32
    return %arg0, %c0_i32 : i32, i32
  }
  func.func @transform_1(%arg0: i32) -> (i32, i32) {
    %c0_i32 = arith.constant 0 : i32
    %c0_i32_0 = arith.constant 0 : i32
    return %arg0, %c0_i32 : i32, i32
  }
  func.func @transform_2(%arg0: i32) -> (i32, i32, i32) {
    %c0_i32 = arith.constant 0 : i32
    %c0_i32_0 = arith.constant 0 : i32
    %c0_i32_1 = arith.constant 0 : i32
    return %arg0, %c0_i32, %c0_i32_0 : i32, i32, i32
  }
}

</mosaic_0001>

<bundles_post_ra>
// kernel: sen_embedding_loss.3
= control target key start
LH: loop header
LB: loop body
LE: loop exit
PB: predicated region body
PF: predicated region fallthrough
CT: control target
= control target key end

     0   :  { %v148_v3 = vmov 0   ;;  %v17_v12 = vlaneseq  ;;  %v149_v36 = vmov 0.0   ;;  %vm87_vm6 = vcmask 7168   ;;  %s215_s0 = inlined_call_operand.vmem [shape: f32[16,256], index: 0, kind: input, shape index: {}]   ;;  %s216_s1 = inlined_call_operand.vmem [shape: s32[16,1], index: 1, kind: input, shape index: {}]   ;;  %s217_s2 = inlined_call_operand.vmem [shape: f32[1,8,128], index: 2, kind: output, shape index: {}]  }
   0x1   :  { %v11_v0 = vld [vmem:[%s215_s0] sm:$0xff]  ;;  %v12_v1 = vld [vmem:[%s215_s0 + $0x8] sm:$0xff]  ;;  %v13_v2 = vld [vmem:[%s215_s0 + $0x10] sm:$0xff]  ;;  %134 = vset.pattern.permute.xlu1 %v148_v3  ;;  %135 = vset.pattern.permute.xlu0 %v148_v3 }
   0x2   :  { %v30_v4 = vmax.f32 %v11_v0, %v12_v1  ;;  %v14_v5 = vld [vmem:[%s215_s0 + $0x18] sm:$0xff]  ;;  %v180_v6 = vld [vmem:[%s216_s1] sm:$0xff]  ;;  %v186_v8 = vld [vmem:[%s216_s1 + $0x8] sm:$0xff]  ;;  %v190_v18 = vand.u32 127, %v17_v12 }
   0x3   :  { %64 = vperm.xlu1 %134, %v180_v6   ;;  %v33_v7 = vmax.f32 %v13_v2, %v14_v5  ;;  %vm26_vm4 = vcmp.ne.s32.totalorder %v180_v6, 4294967196  ;;  %vm27_vm5 = vcmp.ne.s32.totalorder %v186_v8, 4294967196 }
   0x4   :  { %31 = vmax.xlane.f32.xlu0 %v30_v4  ;;  %v62_v22 = vadd.s32 128, %v190_v18  ;;  %v100_v37 = vsel %vm26_vm4, 1.0, %v149_v36  ;;  %v101_v38 = vsel %vm27_vm5, 1.0, %v149_v36  ;;  %vm117_vm8 = vcmp.eq.s32.totalorder %v190_v18, 1 }
   0x5   :  { %v102_v39 = vsel %vm87_vm6, %v100_v37, 0.0  ;;  %v103_v40 = vsel %vm87_vm6, %v101_v38, 0.0  ;;  %vm115_vm9 = vcmp.eq.s32.totalorder %v190_v18, 0 }
   0x6   :  { %v104_v41 = vadd.f32 %v103_v40, %v102_v39 }
   0x7   :  { %67 = vperm.xlu1 %134, %v186_v8  }
   0x8   :  { %34 = vmax.xlane.f32.xlu0 %v33_v7 }
  0x82   :  { %v65_v21 = vpop.permute.xlu1 %64 }
  0x83   :  { %vm69_vm0 = vcmp.eq.s32.totalorder %v190_v18, %v65_v21  ;;  %vm70_vm1 = vcmp.eq.s32.totalorder %v62_v22, %v65_v21 }
  0x84   :  { %v73_v26 = vsel %vm69_vm0, %v11_v0, 0.0  ;;  %v74_v27 = vsel %vm70_vm1, %v12_v1, 0.0 }
  0x85   :  { %v77_v30 = vadd.f32 %v74_v27, %v73_v26 }
  0x86   :  { %v68_v23 = vpop.permute.xlu1 %67 }
  0x87   :  { %vm71_vm2 = vcmp.eq.s32.totalorder %v190_v18, %v68_v23  ;;  %vm72_vm3 = vcmp.eq.s32.totalorder %v62_v22, %v68_v23 }
  0x88   :  { %v75_v32 = vsel %vm71_vm2, %v13_v2, 0.0  ;;  %v76_v33 = vsel %vm72_vm3, %v14_v5, 0.0 }
  0x89   :  { %v80_v35 = vadd.f32 %v76_v33, %v75_v32 }
  0x91   :  { %v32_v9 = vpop.xlane.xlu0 %31 }
  0x92   :  { %v36_v10 = vsub.f32 %v11_v0, %v32_v9  ;;  %v37_v11 = vsub.f32 %v12_v1, %v32_v9 }
  0x94   :  { %v40_v13 = vmul.f32 1.442695, %v36_v10  ;;  %v42_v14 = vmul.f32 1.442695, %v37_v11 }
  0x95   :  { %v35_v15 = vpop.xlane.xlu0 %34 }
  0x96   :  { %136 = vpow2.f32 %v40_v13  ;;  %v38_v16 = vsub.f32 %v13_v2, %v35_v15  ;;  %v39_v17 = vsub.f32 %v14_v5, %v35_v15 }
  0x97   :  { %138 = vpow2.f32 %v42_v14 }
  0x98   :  { %v44_v19 = vmul.f32 1.442695, %v38_v16  ;;  %v46_v20 = vmul.f32 1.442695, %v39_v17 }
  0x9a   :  { %140 = vpow2.f32 %v44_v19 }
  0x9b   :  { %142 = vpow2.f32 %v46_v20 }
  0xa0   :  { %v137_v24 = vpop.eup %136 }
  0xa1   :  { %v139_v25 = vpop.eup %138 }
  0xa2   :  { %v48_v28 = vadd.f32 %v139_v25, %v137_v24 }
  0xa4   :  { %v141_v29 = vpop.eup %140  ;;  %49 = vadd.xlane.f32.xlu0 %v48_v28 }
  0xa5   :  { %v143_v31 = vpop.eup %142 }
  0xa6   :  { %v51_v34 = vadd.f32 %v143_v31, %v141_v29 }
  0xa8   :  { %52 = vadd.xlane.f32.xlu1 %v51_v34  ;;  %78 = vadd.xlane.f32.xlu0 %v77_v30 }
  0xac   :  { %81 = vadd.xlane.f32.xlu0 %v80_v35 }
 0x131   :  { %v50_v42 = vpop.xlane.xlu0 %49 }
 0x132   :  { %144 = vlog2.f32 %v50_v42 }
 0x135   :  { %v53_v43 = vpop.xlane.xlu1 %52  ;;  %v79_v46 = vpop.xlane.xlu0 %78 }
 0x136   :  { %146 = vlog2.f32 %v53_v43 }
 0x139   :  { %v82_v52 = vpop.xlane.xlu0 %81 }
 0x13c   :  { %v145_v44 = vpop.eup %144 }
 0x13d   :  { %v55_v45 = vmul.f32 0.6931472, %v145_v44 }
 0x13f   :  { %v58_v47 = vadd.f32 %v55_v45, %v32_v9  ;;  %v18_v9 = vshrl.u32 %v17_v12, 7 }
 0x140   :  { %v147_v48 = vpop.eup %146 }
 0x141   :  { %v57_v49 = vmul.f32 0.6931472, %v147_v48  ;;  %v83_v50 = vsub.f32 %v58_v47, %v79_v46  ;;  %vm114_vm7 = vcmp.eq.s32.totalorder %v18_v9, 0 }
 0x142   :  { %vm118_vm10 = vmand %vm114_vm7, %vm117_vm8 }
 0x143   :  { %v59_v51 = vadd.f32 %v57_v49, %v35_v15  ;;  %v85_v53 = vsel %vm26_vm4, %v83_v50, 0.0  ;;  %vm116_vm11 = vmand %vm114_vm7, %vm115_vm9 }
 0x144   :  { %v88_v56 = vsel %vm87_vm6, %v85_v53, 0.0 }
 0x145   :  { %v84_v54 = vsub.f32 %v59_v51, %v82_v52 }
 0x147   :  { %v86_v55 = vsel %vm27_vm5, %v84_v54, 0.0 }
 0x148   :  { %v89_v57 = vsel %vm87_vm6, %v86_v55, 0.0 }
 0x149   :  { %v90_v58 = vadd.f32 %v89_v57, %v88_v56 }
 0x14b   :  { %91 = vadd.xlane.f32.xlu0 %v90_v58 }
 0x14f   :  { %105 = vadd.xlane.f32.xlu0 %v104_v41 }
 0x1d8   :  { %v92_v59 = vpop.xlane.xlu0 %91 }
 0x1d9   :  { %v93_v60 = vrot.slane %v92_v59, 4 }
 0x1db   :  { %v94_v61 = vadd.f32 %v93_v60, %v92_v59 }
 0x1dc   :  { %v106_v62 = vpop.xlane.xlu0 %105 }
 0x1dd   :  { %v95_v63 = vrot.slane %v94_v61, 2  ;;  %v107_v0 = vrot.slane %v106_v62, 4 }
 0x1df   :  { %v108_v1 = vadd.f32 %v107_v0, %v106_v62  ;;  %v96_v2 = vadd.f32 %v95_v63, %v94_v61 }
 0x1e1   :  { %v109_v3 = vrot.slane %v108_v1, 2  ;;  %v97_v4 = vrot.slane %v96_v2, 1 }
 0x1e3   :  { %v110_v5 = vadd.f32 %v109_v3, %v108_v1  ;;  %v98_v6 = vadd.f32 %v97_v4, %v96_v2 }
 0x1e5   :  { %128 = vpush %v98_v6  ;;  %v111_v7 = vrot.slane %v110_v5, 1 }
 0x1e7   :  { %v112_v8 = vadd.f32 %v111_v7, %v110_v5 }
 0x1e9   :  { %130 = vpush %v112_v8 }
 0x216   :  { %s129_s0 = spop %128 }
 0x217   :  { %v121_v11 = vstv %s129_s0 }
 0x21a   :  { %s131_s1 = spop %130 }
 0x21b   :  { %v119_v10 = vstv %s131_s1 }
 0x21c   :  { %v120_v13 = vsel %vm118_vm10, %v119_v10, 0.0 }
 0x21d   :  { %v122_v14 = vsel %vm116_vm11, %v121_v11, %v120_v13 }
 0x21e   :  { %123 = vst [vmem:[%s217_s2] sm:$0xff] %v122_v14 }

// kernel: sen_embedding_loss.2
= control target key start
LH: loop header
LB: loop body
LE: loop exit
PB: predicated region body
PF: predicated region fallthrough
CT: control target
= control target key end

     0   :  { %vm1719_vm0 = vcmask 1041408   ;;  %vm380_vm1 = vcmask 1041409   ;;  %vm382_vm2 = vcmask 1042434   ;;  %vm384_vm3 = vcmask 1043459   ;;  %s1711_s2 = inlined_call_operand.vmem [shape: f32[8,2,128], index: 2, kind: input, shape index: {}, may-alias: {2,3}]   ;;  %s1712_s0 = inlined_call_operand.vmem [shape: f32[8,2,128], index: 0, kind: input, shape index: {}, may-alias: {0,1}]   ;;  %s1713_s3 = inlined_call_operand.vmem [shape: f32[8,2,128], index: 3, kind: input, shape index: {}, may-alias: {2,3}]   ;;  %s1714_s1 = inlined_call_operand.vmem [shape: f32[8,2,128], index: 1, kind: input, shape index: {}, may-alias: {0,1}]   ;;  %s1715_s4 = inlined_call_operand.vmem [shape: f32[8,2], index: 4, kind: input, shape index: {}]   ;;  %s1716_s5 = inlined_call_operand.vmem [shape: f32[1,8,128], index: 5, kind: output, shape index: {0}]   ;;  %s1717_s6 = inlined_call_operand.vmem [shape: f32[8,2], index: 6, kind: output, shape index: {1}]   ;;  %s1718_s7 = inlined_call_operand.vmem [shape: f32[8,2], index: 7, kind: output, shape index: {2}]  }
   0x1   :  { %v1152_v0 = vld [vmem:[%s1711_s2] sm:$0x3]  ;;  %v1162_v2 = vld [vmem:[%s1711_s2 + $0x2] sm:$0x3]  ;;  %v1180_v8 = vld [vmem:[%s1711_s2 + $0x4] sm:$0x3] }
   0x2   :  { %v1157_v1 = vld [vmem:[%s1712_s0] sm:$0x3]  ;;  %v218_v3 = vmul.f32 %v1152_v0, %v1152_v0  ;;  %v219_v5 = vmul.f32 %v1162_v2, %v1162_v2  ;;  %v1173_v6 = vld [vmem:[%s1712_s0 + $0x2] sm:$0x3]  ;;  %v1185_v9 = vld [vmem:[%s1712_s0 + $0x4] sm:$0x3]  ;;  %v220_v14 = vmul.f32 %v1180_v8, %v1180_v8  ;;  %v1303_v57 = vmul.f32 %v1162_v2, %v1152_v0 }
   0x3   :  { %v186_v4 = vmul.f32 %v1157_v1, %v1157_v1  ;;  %v187_v7 = vmul.f32 %v1173_v6, %v1173_v6  ;;  %v188_v15 = vmul.f32 %v1185_v9, %v1185_v9  ;;  %v1198_v16 = vld [vmem:[%s1711_s2 + $0x6] sm:$0x3]  ;;  %v1214_v22 = vld [vmem:[%s1711_s2 + $0x8] sm:$0x3]  ;;  %v1230_v28 = vld [vmem:[%s1711_s2 + $0xa] sm:$0x3]  ;;  %v1261_v40 = vmul.f32 %v1173_v6, %v1157_v1 }
   0x4   :  { %v226_v10 = vsel %vm1719_vm0, %v218_v3, 0.0  ;;  %v229_v12 = vsel %vm1719_vm0, %v219_v5, 0.0  ;;  %v1203_v17 = vld [vmem:[%s1712_s0 + $0x6] sm:$0x3]  ;;  %v232_v18 = vsel %vm1719_vm0, %v220_v14, 0.0  ;;  %v221_v20 = vmul.f32 %v1198_v16, %v1198_v16 }
   0x5   :  { %v194_v11 = vsel %vm1719_vm0, %v186_v4, 0.0  ;;  %227 = vadd.xlane.f32.xlu1 %v226_v10  ;;  %v197_v13 = vsel %vm1719_vm0, %v187_v7, 0.0  ;;  %v200_v19 = vsel %vm1719_vm0, %v188_v15, 0.0  ;;  %v189_v21 = vmul.f32 %v1203_v17, %v1203_v17  ;;  %v1219_v23 = vld [vmem:[%s1712_s0 + $0x8] sm:$0x3] }
   0x6   :  { %195 = vadd.xlane.f32.xlu0 %v194_v11  ;;  %v235_v24 = vsel %vm1719_vm0, %v221_v20, 0.0  ;;  %v222_v26 = vmul.f32 %v1214_v22, %v1214_v22  ;;  %v190_v27 = vmul.f32 %v1219_v23, %v1219_v23  ;;  %v1235_v29 = vld [vmem:[%s1712_s0 + $0xa] sm:$0x3]  ;;  %v223_v32 = vmul.f32 %v1230_v28, %v1230_v28  ;;  %v1246_v34 = vld [vmem:[%s1711_s2 + $0xc] sm:$0x3] }
   0x7   :  { %v203_v25 = vsel %vm1719_vm0, %v189_v21, 0.0  ;;  %v191_v33 = vmul.f32 %v1235_v29, %v1235_v29  ;;  %v1251_v35 = vld [vmem:[%s1712_s0 + $0xc] sm:$0x3]  ;;  %v224_v36 = vmul.f32 %v1246_v34, %v1246_v34  ;;  %v1266_v41 = vld [vmem:[%s1711_s2 + $0xe] sm:$0x3]  ;;  %v155_v53 = vmul.f32 %v1162_v2, %v1173_v6 }
   0x8   :  { %v238_v30 = vsel %vm1719_vm0, %v222_v26, 0.0  ;;  %v206_v31 = vsel %vm1719_vm0, %v190_v27, 0.0  ;;  %v241_v37 = vsel %vm1719_vm0, %v223_v32, 0.0  ;;  %v192_v39 = vmul.f32 %v1251_v35, %v1251_v35  ;;  %v1271_v42 = vld [vmem:[%s1712_s0 + $0xe] sm:$0x3] }
   0x9   :  { %230 = vadd.xlane.f32.xlu1 %v229_v12  ;;  %v209_v38 = vsel %vm1719_vm0, %v191_v33, 0.0  ;;  %v244_v43 = vsel %vm1719_vm0, %v224_v36, 0.0  ;;  %v225_v45 = vmul.f32 %v1266_v41, %v1266_v41  ;;  %v193_v46 = vmul.f32 %v1271_v42, %v1271_v42  ;;  %v1282_v47 = vld [vmem:[%s1713_s3] sm:$0x3] }
   0xa   :  { %198 = vadd.xlane.f32.xlu0 %v197_v13  ;;  %v212_v44 = vsel %vm1719_vm0, %v192_v39, 0.0  ;;  %v1287_v48 = vld [vmem:[%s1714_s1] sm:$0x3]  ;;  %v540_v51 = vmul.f32 %v1282_v47, %v1282_v47  ;;  %v154_v54 = vmul.f32 %v1152_v0, %v1157_v1  ;;  %v165_v58 = vsel %vm1719_vm0, %v155_v53, 0.0 }
   0xb   :  { %v247_v49 = vsel %vm1719_vm0, %v225_v45, 0.0  ;;  %v215_v50 = vsel %vm1719_vm0, %v193_v46, 0.0  ;;  %v486_v52 = vmul.f32 %v1287_v48, %v1287_v48  ;;  %v156_v60 = vmul.f32 %v1180_v8, %v1185_v9 }
   0xc   :  { %v541_v55 = vsel %vm1719_vm0, %v540_v51, 0.0  ;;  %v162_v59 = vsel %vm1719_vm0, %v154_v54, 0.0  ;;  %v157_v61 = vmul.f32 %v1198_v16, %v1203_v17  ;;  %v113_v62 = vsub.f32 %v1157_v1, %v1152_v0 }
   0xd   :  { %233 = vadd.xlane.f32.xlu1 %v232_v18  ;;  %v487_v56 = vsel %vm1719_vm0, %v486_v52, 0.0  ;;  %v1315_v63 = vmul.f32 %v1198_v16, %v1180_v8  ;;  %v158_v3 = vmul.f32 %v1214_v22, %v1219_v23  ;;  %v168_v4 = vsel %vm1719_vm0, %v156_v60, 0.0 }
   0xe   :  { %201 = vadd.xlane.f32.xlu0 %v200_v19  ;;  %v171_v5 = vsel %vm1719_vm0, %v157_v61, 0.0  ;;  %v121_v7 = vmul.f32 %v113_v62, %v113_v62  ;;  %v114_v10 = vsub.f32 %v1173_v6, %v1162_v2  ;;  %v159_v11 = vmul.f32 %v1230_v28, %v1235_v29 }
   0xf   :  { %v174_v12 = vsel %vm1719_vm0, %v158_v3, 0.0  ;;  %v115_v15 = vsub.f32 %v1185_v9, %v1180_v8  ;;  %v160_v18 = vmul.f32 %v1246_v34, %v1251_v35  ;;  %v595_v19 = vmul.f32 %v1185_v9, %v1173_v6 }
  0x10   :  { %v130_v13 = vsel %vm1719_vm0, %v121_v7, 0.0  ;;  %v122_v14 = vmul.f32 %v114_v10, %v114_v10  ;;  %v177_v21 = vsel %vm1719_vm0, %v159_v11, 0.0  ;;  %v161_v26 = vmul.f32 %v1266_v41, %v1271_v42 }
  0x11   :  { %236 = vadd.xlane.f32.xlu1 %v235_v24  ;;  %v123_v24 = vmul.f32 %v115_v15, %v115_v15  ;;  %v117_v27 = vsub.f32 %v1219_v23, %v1214_v22  ;;  %v180_v6 = vsel %vm1719_vm0, %v160_v18, 0.0  ;;  %v118_v32 = vsub.f32 %v1235_v29, %v1230_v28 }
  0x12   :  { %204 = vadd.xlane.f32.xlu0 %v203_v25  ;;  %v133_v20 = vsel %vm1719_vm0, %v122_v14, 0.0  ;;  %v116_v25 = vsub.f32 %v1203_v17, %v1198_v16  ;;  %v183_v33 = vsel %vm1719_vm0, %v161_v26, 0.0  ;;  %v119_v39 = vsub.f32 %v1251_v35, %v1246_v34 }
  0x13   :  { %v125_v36 = vmul.f32 %v117_v27, %v117_v27  ;;  %v593_v53 = vmul.f32 %v1287_v48, %v1157_v1  ;;  %v604_v54 = vsel %vm1719_vm0, %v1261_v40, 0.0  ;;  %v597_v1 = vmul.f32 %v1219_v23, %v1203_v17 }
  0x14   :  { %v127_v46 = vmul.f32 %v119_v39, %v119_v39  ;;  %v801_v48 = vmul.f32 %v1282_v47, %v1152_v0  ;;  %v806_v0 = vmul.f32 %v1230_v28, %v1214_v22  ;;  %v599_v62 = vmul.f32 %v1251_v35, %v1235_v29 }
  0x15   :  { %239 = vadd.xlane.f32.xlu1 %v238_v30  ;;  %v136_v30 = vsel %vm1719_vm0, %v123_v24, 0.0  ;;  %v105_v10 = vlaneseq  ;;  %vm386_vm4 = vcmask 1044484   ;;  %vm388_vm5 = vcmask 1045509  }
  0x16   :  { %207 = vadd.xlane.f32.xlu0 %v206_v31  ;;  %v124_v31 = vmul.f32 %v116_v25, %v116_v25  ;;  %v148_v51 = vsel %vm1719_vm0, %v127_v46, 0.0  ;;  %v809_v60 = vsel %vm1719_vm0, %v801_v48, 0.0  ;;  %vm390_vm6 = vcmask 1046534  }
  0x17   :  { %v1391_v14 = vshrl.u32 %v105_v10, 7  ;;  %v1393_v15 = vand.u32 127, %v105_v10  ;;  %vm1720_vm7 = vcmask 1047559   ;;  %vm538_vm8 = vcmask 1040384  }
  0x19   :  { %242 = vadd.xlane.f32.xlu1 %v241_v37  ;;  %v139_v37 = vsel %vm1719_vm0, %v124_v31, 0.0 }
  0x1a   :  { %210 = vadd.xlane.f32.xlu0 %v209_v38  ;;  %v126_v38 = vmul.f32 %v118_v32, %v118_v32 }
  0x1c   :  { %v145_v45 = vsel %vm1719_vm0, %v126_v38, 0.0 }
  0x1d   :  { %245 = vadd.xlane.f32.xlu1 %v244_v43  ;;  %v120_v43 = vsub.f32 %v1271_v42, %v1266_v41 }
  0x1e   :  { %213 = vadd.xlane.f32.xlu0 %v212_v44  ;;  %v142_v44 = vsel %vm1719_vm0, %v125_v36, 0.0 }
  0x21   :  { %248 = vadd.xlane.f32.xlu1 %v247_v49  ;;  %v128_v49 = vmul.f32 %v120_v43, %v120_v43 }
  0x22   :  { %216 = vadd.xlane.f32.xlu0 %v215_v50  ;;  %v803_v50 = vmul.f32 %v1180_v8, %v1162_v2  ;;  %v598_v8 = vmul.f32 %v1235_v29, %v1219_v23  ;;  %v805_v23 = vmul.f32 %v1214_v22, %v1198_v16 }
  0x23   :  { %v151_v52 = vsel %vm1719_vm0, %v128_v49, 0.0 }
  0x24   :  { %v616_v40 = vsel %vm1719_vm0, %v598_v8, 0.0  ;;  %v815_v61 = vsel %vm1719_vm0, %v803_v50, 0.0  ;;  %v821_v47 = vsel %vm1719_vm0, %v805_v23, 0.0 }
  0x25   :  { %542 = vadd.xlane.f32.xlu1 %v541_v55  ;;  %v596_v55 = vmul.f32 %v1203_v17, %v1185_v9  ;;  %v613_v9 = vsel %vm1719_vm0, %v597_v1, 0.0  ;;  %v818_v17 = vsel %vm1719_vm0, %v1315_v63, 0.0  ;;  %v619_v63 = vsel %vm1719_vm0, %v599_v62, 0.0 }
  0x26   :  { %488 = vadd.xlane.f32.xlu0 %v487_v56  ;;  %v601_v56 = vsel %vm1719_vm0, %v593_v53, 0.0 }
  0x27   :  { %v610_v2 = vsel %vm1719_vm0, %v596_v55, 0.0 }
  0x29   :  { %166 = vadd.xlane.f32.xlu1 %v165_v58  ;;  %v607_v58 = vsel %vm1719_vm0, %v595_v19, 0.0  ;;  %v1398_v19 = vsub.s32 %v1393_v15, %v1391_v14 }
  0x2a   :  { %163 = vadd.xlane.f32.xlu0 %v162_v59  ;;  %v812_v59 = vsel %vm1719_vm0, %v1303_v57, 0.0  ;;  %v824_v57 = vsel %vm1719_vm0, %v806_v0, 0.0 }
  0x2d   :  { %172 = vadd.xlane.f32.xlu1 %v171_v5 }
  0x2e   :  { %169 = vadd.xlane.f32.xlu0 %v168_v4 }
  0x31   :  { %131 = vadd.xlane.f32.xlu1 %v130_v13 }
  0x32   :  { %175 = vadd.xlane.f32.xlu0 %v174_v12 }
  0x35   :  { %178 = vadd.xlane.f32.xlu1 %v177_v21 }
  0x36   :  { %134 = vadd.xlane.f32.xlu0 %v133_v20 }
  0x39   :  { %181 = vadd.xlane.f32.xlu1 %v180_v6 }
  0x3a   :  { %137 = vadd.xlane.f32.xlu0 %v136_v30 }
  0x3d   :  { %184 = vadd.xlane.f32.xlu1 %v183_v33 }
  0x3e   :  { %140 = vadd.xlane.f32.xlu0 %v139_v37 }
  0x41   :  { %146 = vadd.xlane.f32.xlu1 %v145_v45 }
  0x42   :  { %143 = vadd.xlane.f32.xlu0 %v142_v44 }
  0x45   :  { %152 = vadd.xlane.f32.xlu1 %v151_v52 }
  0x46   :  { %149 = vadd.xlane.f32.xlu0 %v148_v51 }
  0x49   :  { %605 = vadd.xlane.f32.xlu1 %v604_v54 }
  0x4a   :  { %602 = vadd.xlane.f32.xlu0 %v601_v56 }
  0x4d   :  { %611 = vadd.xlane.f32.xlu1 %v610_v2 }
  0x4e   :  { %608 = vadd.xlane.f32.xlu0 %v607_v58 }
  0x51   :  { %617 = vadd.xlane.f32.xlu1 %v616_v40 }
  0x52   :  { %614 = vadd.xlane.f32.xlu0 %v613_v9 }
  0x55   :  { %813 = vadd.xlane.f32.xlu1 %v812_v59 }
  0x56   :  { %810 = vadd.xlane.f32.xlu0 %v809_v60 }
  0x59   :  { %819 = vadd.xlane.f32.xlu1 %v818_v17 }
  0x5a   :  { %816 = vadd.xlane.f32.xlu0 %v815_v61 }
  0x5d   :  { %822 = vadd.xlane.f32.xlu1 %v821_v47 }
  0x5e   :  { %825 = vadd.xlane.f32.xlu0 %v824_v57 }
  0x62   :  { %620 = vadd.xlane.f32.xlu0 %v619_v63 }
  0x92   :  { %v228_v16 = vpop.xlane.xlu1 %227 }
  0x93   :  { %v196_v3 = vpop.xlane.xlu0 %195  ;;  %v560_v27 = vrot.slane %v228_v16, %v1398_v19 }
  0x94   :  { %v1389_v11 = vmul.f32 %v228_v16, %v196_v3  ;;  %v506_v31 = vrot.slane %v196_v3, %v1398_v19 }
  0x96   :  { %v231_v4 = vpop.xlane.xlu1 %230  ;;  %1040 = vrsqrt.f32 %v1389_v11  ;;  %vm260_vm9 = vcmp.eq.f32.partialorder %v1389_v11, inf  ;;  %vm262_vm10 = vcmp.eq.f32.partialorder %v1389_v11, 0.0 }
  0x97   :  { %v199_v5 = vpop.xlane.xlu0 %198  ;;  %v564_v20 = vrot.slane %v231_v4, %v1398_v19 }
  0x98   :  { %v1401_v21 = vmul.f32 %v231_v4, %v199_v5  ;;  %v510_v24 = vrot.slane %v199_v5, %v1398_v19 }
  0x99   :  { %v585_v33 = vsel %vm382_vm2, %v564_v20, %v560_v27  ;;  %v838_v36 = vsel %vm380_vm1, %v564_v20, %v560_v27 }
  0x9a   :  { %v234_v7 = vpop.xlane.xlu1 %233  ;;  %1042 = vrsqrt.f32 %v1401_v21  ;;  %v531_v39 = vsel %vm382_vm2, %v510_v24, %v506_v31  ;;  %v630_v43 = vsel %vm380_vm1, %v510_v24, %v506_v31  ;;  %vm267_vm11 = vcmp.eq.f32.partialorder %v1401_v21, inf }
  0x9b   :  { %v202_v22 = vpop.xlane.xlu0 %201  ;;  %v568_v30 = vrot.slane %v234_v7, %v1398_v19  ;;  %vm269_vm13 = vcmp.eq.f32.partialorder %v1401_v21, 0.0 }
  0x9c   :  { %v1406_v6 = vmul.f32 %v234_v7, %v202_v22  ;;  %v514_v32 = vrot.slane %v202_v22, %v1398_v19 }
  0x9d   :  { %v586_v49 = vsel %vm384_vm3, %v568_v30, %v585_v33  ;;  %v839_v52 = vsel %vm382_vm2, %v568_v30, %v838_v36 }
  0x9e   :  { %v237_v12 = vpop.xlane.xlu1 %236  ;;  %1044 = vrsqrt.f32 %v1406_v6  ;;  %v532_v53 = vsel %vm384_vm3, %v514_v32, %v531_v39  ;;  %v631_v56 = vsel %vm382_vm2, %v514_v32, %v630_v43  ;;  %vm274_vm12 = vcmp.eq.f32.partialorder %v1406_v6, inf }
  0x9f   :  { %v205_v13 = vpop.xlane.xlu0 %204  ;;  %v572_v37 = vrot.slane %v237_v12, %v1398_v19  ;;  %vm276_vm14 = vcmp.eq.f32.partialorder %v1406_v6, 0.0 }
  0xa0   :  { %v1041_v38 = vpop.eup %1040  ;;  %v1416_v44 = vmul.f32 %v237_v12, %v205_v13  ;;  %v518_v50 = vrot.slane %v205_v13, %v1398_v19 }
  0xa1   :  { %v587_v2 = vsel %vm386_vm4, %v572_v37, %v586_v49  ;;  %v259_v58 = vmul.f32 %v1041_v38, %v1389_v11  ;;  %v840_v1 = vsel %vm384_vm3, %v572_v37, %v839_v52  ;;  %v263_v49 = vand.u32 2147483648, %v1389_v11 }
  0xa2   :  { %v240_v29 = vpop.xlane.xlu1 %239  ;;  %1046 = vrsqrt.f32 %v1416_v44  ;;  %v533_v60 = vsel %vm386_vm4, %v518_v50, %v532_v53  ;;  %v632_v17 = vsel %vm384_vm3, %v518_v50, %v631_v56  ;;  %vm281_vm15 = vcmp.eq.f32.partialorder %v1416_v44, inf }
  0xa3   :  { %v208_v18 = vpop.xlane.xlu0 %207  ;;  %v576_v51 = vrot.slane %v240_v29, %v1398_v19  ;;  %v261_v43 = vsel %vm260_vm9, %v1389_v11, %v259_v58  ;;  %v270_v58 = vand.u32 2147483648, %v1401_v21 }
  0xa4   :  { %v1424_v54 = vmul.f32 %v240_v29, %v208_v18  ;;  %v522_v55 = vrot.slane %v208_v18, %v1398_v19  ;;  %v1043_v20 = vpop.eup %1042  ;;  %v264_v52 = vsel %vm262_vm10, %v263_v49, %v261_v43 }
  0xa5   :  { %v588_v23 = vsel %vm388_vm5, %v576_v51, %v587_v2  ;;  %v841_v61 = vsel %vm386_vm4, %v576_v51, %v840_v1  ;;  %v314_v11 = vmax.f32 %v264_v52, 1e-08 }
  0xa6   :  { %v243_v25 = vpop.xlane.xlu1 %242  ;;  %1048 = vrsqrt.f32 %v1424_v54  ;;  %v534_v0 = vsel %vm388_vm5, %v522_v55, %v533_v60  ;;  %v633_v62 = vsel %vm386_vm4, %v522_v55, %v632_v17  ;;  %v657_v17 = vsub.s32 1, %v1391_v14 }
  0xa7   :  { %v211_v26 = vpop.xlane.xlu0 %210  ;;  %v580_v8 = vrot.slane %v243_v25, %v1398_v19  ;;  %vm288_vm9 = vcmp.eq.f32.partialorder %v1424_v54, inf  ;;  %vm290_vm10 = vcmp.eq.f32.partialorder %v1424_v54, 0.0 }
  0xa8   :  { %v1434_v40 = vmul.f32 %v243_v25, %v211_v26  ;;  %v526_v9 = vrot.slane %v211_v26, %v1398_v19  ;;  %v1045_v30 = vpop.eup %1044 }
  0xa9   :  { %v589_v63 = vsel %vm390_vm6, %v580_v8, %v588_v23  ;;  %v842_v4 = vsel %vm388_vm5, %v580_v8, %v841_v61  ;;  %v273_v51 = vmul.f32 %v1045_v30, %v1406_v6 }
  0xaa   :  { %v246_v45 = vpop.xlane.xlu1 %245  ;;  %1050 = vrsqrt.f32 %v1434_v40  ;;  %v535_v5 = vsel %vm390_vm6, %v526_v9, %v534_v0  ;;  %v634_v12 = vsel %vm388_vm5, %v526_v9, %v633_v62  ;;  %v277_v9 = vand.u32 2147483648, %v1406_v6 }
  0xab   :  { %v214_v46 = vpop.xlane.xlu0 %213  ;;  %v584_v47 = vrot.slane %v246_v45, %v1398_v19  ;;  %v275_v1 = vsel %vm274_vm12, %v1406_v6, %v273_v51  ;;  %v284_v6 = vand.u32 2147483648, %v1416_v44  ;;  %v291_v62 = vand.u32 2147483648, %v1424_v54 }
  0xac   :  { %v530_v57 = vrot.slane %v214_v46, %v1398_v19  ;;  %v1452_v7 = vmul.f32 %v246_v45, %v214_v46  ;;  %v266_v46 = vmul.f32 %v1043_v20, %v1401_v21  ;;  %v1047_v50 = vpop.eup %1046  ;;  %v1505_v23 = vsel %vm276_vm14, %v277_v9, %v275_v1 }
  0xad   :  { %v590_v24 = vsel %vm1720_vm7, %v584_v47, %v589_v63  ;;  %v843_v25 = vsel %vm390_vm6, %v584_v47, %v842_v4  ;;  %v280_v61 = vmul.f32 %v1047_v50, %v1416_v44  ;;  %vm297_vm12 = vcmp.eq.f32.partialorder %v1434_v40, 0.0 }
  0xae   :  { %v249_v48 = vpop.xlane.xlu1 %248  ;;  %v536_v26 = vsel %vm1720_vm7, %v530_v57, %v535_v5  ;;  %v635_v27 = vsel %vm390_vm6, %v530_v57, %v634_v12  ;;  %1052 = vrsqrt.f32 %v1452_v7  ;;  %v268_v2 = vsel %vm267_vm11, %v1401_v21, %v266_v46 }
  0xaf   :  { %v217_v59 = vpop.xlane.xlu0 %216  ;;  %v837_v16 = vrot.slane %v249_v48, %v1398_v19  ;;  %v664_v21 = vsub.s32 2, %v1391_v14  ;;  %vm295_vm11 = vcmp.eq.f32.partialorder %v1434_v40, inf  ;;  %v298_v5 = vand.u32 2147483648, %v1434_v40 }
  0xb0   :  { %v629_v3 = vrot.slane %v217_v59, %v1398_v19  ;;  %v1455_v13 = vmul.f32 %v249_v48, %v217_v59  ;;  %v1049_v53 = vpop.eup %1048  ;;  %v1497_v48 = vsel %vm269_vm13, %v270_v58, %v268_v2  ;;  %vm302_vm13 = vcmp.eq.f32.partialorder %v1452_v7, inf }
  0xb1   :  { %v844_v31 = vsel %vm1720_vm7, %v837_v16, %v843_v25  ;;  %v315_v57 = vmax.f32 %v1497_v48, 1e-08  ;;  %v316_v16 = vmax.f32 %v1505_v23, 1e-08 }
  0xb2   :  { %v543_v22 = vpop.xlane.xlu1 %542  ;;  %v636_v32 = vsel %vm1720_vm7, %v629_v3, %v635_v27  ;;  %1054 = vrsqrt.f32 %v1455_v13  ;;  %v287_v3 = vmul.f32 %v1049_v53, %v1424_v54  ;;  %v312_v53 = vand.u32 2147483648, %v1455_v13 }
  0xb3   :  { %v489_v10 = vpop.xlane.xlu0 %488  ;;  %v548_v29 = vrot.slane %v543_v22, %v1398_v19 }
  0xb4   :  { %v494_v18 = vrot.slane %v489_v10, %v1398_v19  ;;  %v1051_v8 = vpop.eup %1050 }
  0xb5   :  { %v592_v33 = vsel %vm538_vm8, %v548_v29, %v590_v24  ;;  %v282_v29 = vsel %vm281_vm15, %v1416_v44, %v280_v61 }
  0xb6   :  { %v539_v36 = vsel %vm538_vm8, %v494_v18, %v536_v26  ;;  %v1468_v37 = vmul.f32 %v844_v31, %v592_v33  ;;  %v1472_v39 = vpop.xlane.xlu1 %166  ;;  %vm283_vm8 = vcmp.eq.f32.partialorder %v1416_v44, 0.0  ;;  %v294_v18 = vmul.f32 %v1051_v8, %v1434_v40 }
  0xb7   :  { %v1470_v38 = vmul.f32 %v636_v32, %v539_v36  ;;  %v1477_v45 = vpop.xlane.xlu0 %163  ;;  %v289_v32 = vsel %vm288_vm9, %v1424_v54, %v287_v3  ;;  %v285_v49 = vsel %vm283_vm8, %v284_v6, %v282_v29  ;;  %vm309_vm9 = vcmp.eq.f32.partialorder %v1455_v13, inf }
  0xb8   :  { %1056 = vrsqrt.f32 %v1468_v37  ;;  %v1053_v0 = vpop.eup %1052  ;;  %vm849_vm14 = vcmp.eq.f32.partialorder %v1468_v37, inf  ;;  %v852_v20 = vand.u32 2147483648, %v1468_v37  ;;  %vm851_vm15 = vcmp.eq.f32.partialorder %v1468_v37, 0.0 }
  0xb9   :  { %1058 = vrsqrt.f32 %v1470_v38  ;;  %v301_v25 = vmul.f32 %v1053_v0, %v1452_v7  ;;  %vm641_vm0 = vcmp.eq.f32.partialorder %v1470_v38, inf  ;;  %v644_v27 = vand.u32 2147483648, %v1470_v38 }
  0xba   :  { %v1489_v56 = vpop.xlane.xlu1 %172  ;;  %1060 = vrcp.f32 %v314_v11  ;;  %vm643_vm7 = vcmp.eq.f32.partialorder %v1470_v38, 0.0  ;;  %v292_v51 = vsel %vm290_vm10, %v291_v62, %v289_v32  ;;  %v305_v44 = vand.u32 2147483648, %v1452_v7 }
  0xbb   :  { %v1487_v55 = vpop.xlane.xlu0 %169  ;;  %v318_v61 = vmax.f32 %v292_v51, 1e-08  ;;  %1062 = vrcp.f32 %v315_v57  ;;  %vm1721_vm8 = vcmask 1047559   ;;  %vm397_vm10 = vcmask 15360  }
  0xbc   :  { %v1055_v47 = vpop.eup %1054  ;;  %1064 = vrcp.f32 %v316_v16 }
  0xbd   :  { %v308_v30 = vmul.f32 %v1055_v47, %v1455_v13 }
  0xbe   :  { %v1502_v60 = vpop.xlane.xlu1 %131 }
  0xbf   :  { %v1500_v59 = vpop.xlane.xlu0 %175  ;;  %v310_v52 = vsel %vm309_vm9, %v1455_v13, %v308_v30  ;;  %v351_v0 = vrot.slane %v1502_v60, %v1398_v19  ;;  %vm477_vm9 = vcmp.eq.s32.totalorder %v1393_v15, 0 }
  0xc2   :  { %v1057_v63 = vpop.eup %1056  ;;  %v1521_v22 = vpop.xlane.xlu1 %178 }
  0xc3   :  { %v135_v4 = vpop.xlane.xlu0 %134  ;;  %v1059_v10 = vpop.eup %1058  ;;  %v848_v12 = vmul.f32 %v1057_v63, %v1468_v37 }
  0xc4   :  { %v640_v24 = vmul.f32 %v1059_v10, %v1470_v38  ;;  %v1061_v2 = vpop.eup %1060  ;;  %v355_v58 = vrot.slane %v135_v4, %v1398_v19 }
  0xc5   :  { %v850_v26 = vsel %vm849_vm14, %v1468_v37, %v848_v12  ;;  %v296_v37 = vsel %vm295_vm11, %v1434_v40, %v294_v18  ;;  %vm1722_vm11 = vmmov %vm1721_vm8 }
  0xc6   :  { %v642_v31 = vsel %vm641_vm0, %v1470_v38, %v640_v24  ;;  %v1543_v36 = vpop.xlane.xlu1 %181  ;;  %v853_v43 = vsel %vm851_vm15, %v852_v20, %v850_v26  ;;  %v303_v38 = vsel %vm302_vm13, %v1452_v7, %v301_v25  ;;  %vm304_vm0 = vcmp.eq.f32.partialorder %v1452_v7, 0.0 }
  0xc7   :  { %v138_v33 = vpop.xlane.xlu0 %137  ;;  %v645_v46 = vsel %vm643_vm7, %v644_v27, %v642_v31  ;;  %v1562_v8 = vmax.f32 %v853_v43, 1e-06  ;;  %v299_v11 = vsel %vm297_vm12, %v298_v5, %v296_v37  ;;  %v317_v7 = vmax.f32 %v285_v49, 1e-08  ;;  %v111_v27 = vld [vmem:[%s1715_s4] sm:$0xff]  ;;  %v1063_v31 = vpop.eup %1062 }
  0xc8   :  { %v1550_v50 = vmax.f32 %v645_v46, 1e-06  ;;  %v359_v48 = vrot.slane %v138_v33, %v1398_v19  ;;  %v306_v23 = vsel %vm304_vm0, %v305_v44, %v303_v38  ;;  %vm311_vm7 = vcmp.eq.f32.partialorder %v1455_v13, 0.0  ;;  %v1065_v33 = vpop.eup %1064 }
  0xc9   :  { %v313_v6 = vsel %vm311_vm7, %v312_v53, %v310_v52  ;;  %v319_v47 = vmax.f32 %v299_v11, 1e-08  ;;  %v381_v62 = vsel %vm380_vm1, %v355_v58, %v351_v0  ;;  %v320_v63 = vmax.f32 %v306_v23, 1e-08 }
  0xca   :  { %v658_v54 = vrot.slane %v1550_v50, %v657_v17  ;;  %v1570_v9 = vpop.xlane.xlu1 %184  ;;  %v873_v4 = vrot.slane %v1562_v8, %v664_v21  ;;  %1066 = vrcp.f32 %v317_v7  ;;  %v383_v5 = vsel %vm382_vm2, %v359_v48, %v381_v62 }
  0xcb   :  { %v141_v1 = vpop.xlane.xlu0 %140  ;;  %v321_v60 = vmax.f32 %v313_v6, 1e-08  ;;  %1068 = vrcp.f32 %v318_v61  ;;  %v325_v43 = vmul.f32 %v1063_v31, %v1472_v39  ;;  %v323_v46 = vmul.f32 %v1061_v2, %v1477_v45 }
  0xcc   :  { %v363_v40 = vrot.slane %v141_v1, %v1398_v19  ;;  %660 = vbcast.lane.b32.xlu1 %v658_v54, 256  ;;  %1070 = vrcp.f32 %v319_v47  ;;  %v327_v37 = vmul.f32 %v1065_v33, %v1487_v55  ;;  %vm1723_vm12 = vcmask 1041408  }
  0xcd   :  { %1072 = vrcp.f32 %v320_v63  ;;  %v409_v53 = vsub.f32 1.0, %v325_v43  ;;  %v408_v58 = vsub.f32 1.0, %v323_v46  ;;  %v678_v31 = vsub.s32 4, %v1391_v14  ;;  %vm1724_vm13 = vmmov %vm1723_vm12 }
  0xce   :  { %v147_v13 = vpop.xlane.xlu1 %146  ;;  %v385_v57 = vsel %vm384_vm3, %v363_v40, %v383_v5  ;;  %1074 = vrcp.f32 %v321_v60  ;;  %v410_v54 = vsub.f32 1.0, %v327_v37  ;;  %v650_v5 = vsub.s32 0, %v1391_v14  ;;  %vm1725_vm14 = vmmov %vm1723_vm12 }
  0xcf   :  { %v144_v3 = vpop.xlane.xlu0 %143  ;;  %v371_v16 = vrot.slane %v147_v13, %v1398_v19  ;;  %v431_v55 = vrot.slane %v409_v53, %v1398_v19  ;;  %v427_v7 = vrot.slane %v408_v58, %v1398_v19  ;;  %v887_v46 = vrot.slane %v1562_v8, %v678_v31 }
  0xd0   :  { %v367_v10 = vrot.slane %v144_v3, %v1398_v19  ;;  %875 = vbcast.lane.b32.xlu1 %v873_v4, 256  ;;  %v435_v61 = vrot.slane %v410_v54, %v1398_v19  ;;  %v692_v37 = vsub.s32 6, %v1391_v14  ;;  %vm476_vm15 = vcmp.eq.s32.totalorder %v1391_v14, 0 }
  0xd1   :  { %v456_v6 = vsel %vm380_vm1, %v431_v55, %v427_v7  ;;  %vm479_vm0 = vcmp.eq.s32.totalorder %v1393_v15, 1 }
  0xd2   :  { %v387_v12 = vsel %vm386_vm4, %v367_v10, %v385_v57  ;;  %v153_v18 = vpop.xlane.xlu1 %152  ;;  %v651_v57 = vrot.slane %v1550_v50, %v650_v5  ;;  %vm480_vm7 = vmand %vm476_vm15, %vm479_vm0 }
  0xd3   :  { %v150_v29 = vpop.xlane.xlu0 %149  ;;  %v379_v24 = vrot.slane %v153_v18, %v1398_v19  ;;  %v389_v25 = vsel %vm388_vm5, %v371_v16, %v387_v12  ;;  %v807_v12 = vmul.f32 %v1246_v34, %v1230_v28  ;;  %v665_v28 = vrot.slane %v1550_v50, %v664_v21 }
  0xd4   :  { %v375_v20 = vrot.slane %v150_v29, %v1398_v19  ;;  %v1067_v49 = vpop.eup %1066  ;;  %v859_v29 = vrot.slane %v1562_v8, %v650_v5  ;;  %v808_v21 = vmul.f32 %v1266_v41, %v1246_v34  ;;  %v693_v34 = vrot.slane %v1550_v50, %v692_v37 }
  0xd5   :  { %v1069_v51 = vpop.eup %1068  ;;  %v329_v11 = vmul.f32 %v1067_v49, %v1489_v56  ;;  %v685_v49 = vsub.s32 5, %v1391_v14  ;;  %v699_v41 = vsub.s32 7, %v1391_v14 }
  0xd6   :  { %v391_v26 = vsel %vm390_vm6, %v375_v20, %v389_v25  ;;  %v1071_v44 = vpop.eup %1070  ;;  %v331_v39 = vmul.f32 %v1069_v51, %v1500_v59  ;;  %v827_v20 = vsel %vm1723_vm12, %v807_v12, 0.0  ;;  %v1108_v25 = vmov 0  }
  0xd7   :  { %v393_v30 = vsel %vm1721_vm8, %v379_v24, %v391_v26  ;;  %v1073_v52 = vpop.eup %1072  ;;  %v333_v45 = vmul.f32 %v1071_v44, %v1521_v22  ;;  %v411_v48 = vsub.f32 1.0, %v329_v11  ;;  %v457_v22 = vsel %vm382_vm2, %v435_v61, %v456_v6  ;;  %1038 = vset.pattern.permute.xlu0 %v1108_v25  ;;  %1039 = vset.pattern.permute.xlu1 %v1108_v25  ;;  %vm478_vm8 = vmand %vm476_vm15, %vm477_vm9 }
  0xd8   :  { %v395_v32 = vmul.f32 %v393_v30, %v111_v27  ;;  %v1075_v1 = vpop.eup %1074  ;;  %v335_v2 = vmul.f32 %v1073_v52, %v1543_v36  ;;  %v412_v0 = vsub.f32 1.0, %v331_v39  ;;  %v866_v24 = vrot.slane %v1562_v8, %v657_v17  ;;  %v606_v52 = vpop.xlane.xlu1 %605 }
  0xd9   :  { %v337_v23 = vmul.f32 %v1075_v1, %v1570_v9  ;;  %v413_v40 = vsub.f32 1.0, %v333_v45  ;;  %v439_v59 = vrot.slane %v411_v48, %v1398_v19  ;;  %v671_v26 = vsub.s32 3, %v1391_v14 }
  0xda   :  { %v398_v38 = vsel %vm397_vm10, %v395_v32, 0.0  ;;  %v414_v56 = vsub.f32 1.0, %v335_v2  ;;  %v443_v36 = vrot.slane %v412_v0, %v1398_v19  ;;  %v679_v17 = vrot.slane %v1550_v50, %v678_v31 }
  0xdb   :  { %399 = vadd.xlane.f32.xlu0 %v398_v38  ;;  %v415_v47 = vsub.f32 1.0, %v337_v23  ;;  %v447_v62 = vrot.slane %v413_v40, %v1398_v19  ;;  %v458_v9 = vsel %vm384_vm3, %v439_v59, %v457_v22  ;;  %v880_v30 = vrot.slane %v1562_v8, %v671_v26 }
  0xdc   :  { %v451_v63 = vrot.slane %v414_v56, %v1398_v19  ;;  %v459_v4 = vsel %vm386_vm4, %v443_v36, %v458_v9  ;;  %v600_v32 = vmul.f32 %v1271_v42, %v1251_v35  ;;  %v830_v43 = vsel %vm1725_vm14, %v808_v21, 0.0  ;;  %v603_v42 = vpop.xlane.xlu0 %602  ;;  %v612_v1 = vpop.xlane.xlu1 %611 }
  0xdd   :  { %v455_v3 = vrot.slane %v415_v47, %v1398_v19  ;;  %v460_v13 = vsel %vm388_vm5, %v447_v62, %v459_v4  ;;  %v686_v38 = vrot.slane %v1550_v50, %v685_v49  ;;  %v901_v35 = vrot.slane %v1562_v8, %v692_v37 }
  0xde   :  { %v461_v60 = vsel %vm390_vm6, %v451_v63, %v460_v13  ;;  %v622_v33 = vsel %vm1724_vm13, %v600_v32, 0.0  ;;  %v894_v51 = vrot.slane %v1562_v8, %v685_v49  ;;  %v700_v53 = vrot.slane %v1550_v50, %v699_v41 }
  0xdf   :  { %v462_v10 = vsel %vm1722_vm11, %v455_v3, %v461_v60  ;;  %v908_v11 = vrot.slane %v1562_v8, %v699_v41 }
  0xe0   :  { %v464_v16 = vmul.f32 %v462_v10, %v111_v27  ;;  %v672_v27 = vrot.slane %v1550_v50, %v671_v26  ;;  %v609_v44 = vpop.xlane.xlu0 %608  ;;  %v1654_v39 = vpop.xlane.xlu1 %617 }
  0xe2   :  { %v466_v18 = vsel %vm397_vm10, %v464_v16, 0.0 }
  0xe4   :  { %v1651_v58 = vpop.xlane.xlu0 %614  ;;  %v814_v2 = vpop.xlane.xlu1 %813 }
  0xe8   :  { %v811_v54 = vpop.xlane.xlu0 %810  ;;  %v820_v7 = vpop.xlane.xlu1 %819 }
  0xec   :  { %v817_v45 = vpop.xlane.xlu0 %816  ;;  %v1660_v23 = vpop.xlane.xlu1 %822 }
  0xf0   :  { %v1656_v55 = vpop.xlane.xlu0 %825 }
  0xf1   :  { %653 = vbcast.lane.b32.xlu0 %v651_v57, 256 }
  0xf4   :  { %467 = vadd.xlane.f32.xlu1 %v466_v18  ;;  %v1658_v48 = vpop.xlane.xlu0 %620 }
  0xf5   :  { %861 = vbcast.lane.b32.xlu0 %v859_v29, 256 }
  0xf8   :  { %828 = vadd.xlane.f32.xlu1 %v827_v20 }
  0xf9   :  { %868 = vbcast.lane.b32.xlu0 %v866_v24, 256 }
  0xfd   :  { %667 = vbcast.lane.b32.xlu0 %v665_v28, 256 }
 0x101   :  { %674 = vbcast.lane.b32.xlu0 %v672_v27, 256 }
 0x105   :  { %882 = vbcast.lane.b32.xlu0 %v880_v30, 256 }
 0x109   :  { %681 = vbcast.lane.b32.xlu1 %v679_v17, 256 }
 0x124   :  { %623 = vadd.xlane.f32.xlu0 %v622_v33 }
 0x12d   :  { %831 = vadd.xlane.f32.xlu1 %v830_v43 }
 0x13a   :  { %889 = vbcast.lane.b32.xlu0 %v887_v46, 256 }
 0x13e   :  { %688 = vbcast.lane.b32.xlu0 %v686_v38, 256  ;;  %903 = vbcast.lane.b32.xlu1 %v901_v35, 256  ;;  %v661_v40 = vpop.permute.xlu1 %660 }
 0x142   :  { %896 = vbcast.lane.b32.xlu0 %v894_v51, 256  ;;  %v876_v36 = vpop.permute.xlu1 %875 }
 0x146   :  { %695 = vbcast.lane.b32.xlu0 %v693_v34, 256 }
 0x14a   :  { %702 = vbcast.lane.b32.xlu0 %v700_v53, 256 }
 0x14e   :  { %910 = vbcast.lane.b32.xlu0 %v908_v11, 256 }
 0x168   :  { %v400_v50 = vpop.xlane.xlu0 %399 }
 0x169   :  { %v401_v61 = vrot.slane %v400_v50, 4 }
 0x16b   :  { %v402_v0 = vadd.f32 %v401_v61, %v400_v50 }
 0x16c   :  { %v654_v56 = vpop.permute.xlu0 %653 }
 0x16d   :  { %v403_v8 = vrot.slane %v402_v0, 2  ;;  %1076 = vrcp.f32 %v654_v56 }
 0x16e   :  { %1078 = vrcp.f32 %v661_v40 }
 0x16f   :  { %v404_v6 = vadd.f32 %v403_v8, %v402_v0 }
 0x170   :  { %v862_v59 = vpop.permute.xlu0 %861 }
 0x171   :  { %1080 = vrcp.f32 %v862_v59  ;;  %v405_v47 = vrot.slane %v404_v6, 1 }
 0x173   :  { %v406_v22 = vadd.f32 %v405_v47, %v404_v6 }
 0x174   :  { %v869_v62 = vpop.permute.xlu0 %868 }
 0x175   :  { %1082 = vrcp.f32 %v869_v62  ;;  %1033 = vpush %v406_v22 }
 0x176   :  { %1084 = vrcp.f32 %v876_v36 }
 0x177   :  { %v1077_v63 = vpop.eup %1076 }
 0x178   :  { %v668_v9 = vpop.permute.xlu0 %667  ;;  %v713_v3 = vmul.f32 %v1077_v63, %v603_v42  ;;  %v1079_v4 = vpop.eup %1078 }
 0x179   :  { %1086 = vrcp.f32 %v668_v9  ;;  %v715_v10 = vmul.f32 %v1079_v4, %v606_v52 }
 0x17a   :  { %737 = vperm.xlu0 %1038, %v713_v3  }
 0x17b   :  { %v1081_v13 = vpop.eup %1080 }
 0x17c   :  { %v675_v5 = vpop.permute.xlu0 %674  ;;  %v921_v60 = vmul.f32 %v1081_v13, %v811_v54 }
 0x17d   :  { %1088 = vrcp.f32 %v675_v5 }
 0x17e   :  { %945 = vperm.xlu1 %1039, %v921_v60   ;;  %740 = vperm.xlu0 %1038, %v715_v10  }
 0x17f   :  { %v1083_v57 = vpop.eup %1082 }
 0x180   :  { %v883_v16 = vpop.permute.xlu0 %882  ;;  %v923_v12 = vmul.f32 %v1083_v57, %v814_v2  ;;  %v1085_v29 = vpop.eup %1084 }
 0x181   :  { %1090 = vrcp.f32 %v883_v16  ;;  %v468_v18 = vpop.xlane.xlu1 %467  ;;  %v925_v25 = vmul.f32 %v1085_v29, %v817_v45 }
 0x182   :  { %948 = vperm.xlu0 %1038, %v923_v12   ;;  %v469_v24 = vrot.slane %v468_v18, 4 }
 0x183   :  { %v1087_v20 = vpop.eup %1086 }
 0x184   :  { %v717_v28 = vmul.f32 %v1087_v20, %v609_v44  ;;  %v470_v26 = vadd.f32 %v469_v24, %v468_v18 }
 0x185   :  { %v829_v27 = vpop.xlane.xlu1 %828 }
 0x186   :  { %743 = vperm.xlu1 %1039, %v717_v28   ;;  %951 = vperm.xlu0 %1038, %v925_v25   ;;  %v471_v31 = vrot.slane %v470_v26, 2 }
 0x187   :  { %v1089_v30 = vpop.eup %1088 }
 0x188   :  { %v719_v17 = vmul.f32 %v1089_v30, %v612_v1  ;;  %v472_v32 = vadd.f32 %v471_v31, %v470_v26 }
 0x189   :  { %v682_v33 = vpop.permute.xlu1 %681 }
 0x18a   :  { %746 = vperm.xlu1 %1039, %v719_v17   ;;  %1092 = vrcp.f32 %v682_v33  ;;  %v473_v43 = vrot.slane %v472_v32, 1 }
 0x18b   :  { %v1091_v21 = vpop.eup %1090 }
 0x18c   :  { %v927_v46 = vmul.f32 %v1091_v21, %v820_v7  ;;  %v474_v49 = vadd.f32 %v473_v43, %v472_v32 }
 0x18e   :  { %954 = vperm.xlu0 %1038, %v927_v46   ;;  %1035 = vpush %v474_v49 }
 0x194   :  { %v1093_v37 = vpop.eup %1092 }
 0x195   :  { %v721_v38 = vmul.f32 %v1093_v37, %v1651_v58 }
 0x197   :  { %749 = vperm.xlu1 %1039, %v721_v38  }
 0x1a6   :  { %s1034_s4 = spop %1033 }
 0x1a7   :  { %v483_v1 = vstv %s1034_s4 }
 0x1b1   :  { %v624_v35 = vpop.xlane.xlu0 %623 }
 0x1b5   :  { %v890_v42 = vpop.permute.xlu0 %889 }
 0x1b6   :  { %1094 = vrcp.f32 %v890_v42 }
 0x1b9   :  { %v689_v51 = vpop.permute.xlu0 %688 }
 0x1ba   :  { %1096 = vrcp.f32 %v689_v51  ;;  %v832_v34 = vpop.xlane.xlu1 %831 }
 0x1bd   :  { %v897_v41 = vpop.permute.xlu0 %896 }
 0x1be   :  { %1098 = vrcp.f32 %v897_v41  ;;  %v904_v44 = vpop.permute.xlu1 %903 }
 0x1bf   :  { %1100 = vrcp.f32 %v904_v44  ;;  %s1036_s12 = spop %1035 }
 0x1c0   :  { %v1095_v52 = vpop.eup %1094  ;;  %v481_v53 = vstv %s1036_s12 }
 0x1c1   :  { %v696_v58 = vpop.permute.xlu0 %695  ;;  %v929_v11 = vmul.f32 %v1095_v52, %v1660_v23  ;;  %v482_v54 = vsel %vm480_vm7, %v481_v53, 0.0 }
 0x1c2   :  { %1102 = vrcp.f32 %v696_v58  ;;  %v484_v14 = vsel %vm478_vm8, %v483_v1, %v482_v54 }
 0x1c3   :  { %957 = vperm.xlu0 %1038, %v929_v11   ;;  %485 = vst [vmem:[%s1716_s5] sm:$0xff] %v484_v14 }
 0x1c4   :  { %v1097_v45 = vpop.eup %1096 }
 0x1c5   :  { %v703_v15 = vpop.permute.xlu0 %702  ;;  %v723_v2 = vmul.f32 %v1097_v45, %v1654_v39 }
 0x1c6   :  { %1104 = vrcp.f32 %v703_v15 }
 0x1c7   :  { %752 = vperm.xlu1 %1039, %v723_v2  }
 0x1c8   :  { %v1099_v7 = vpop.eup %1098 }
 0x1c9   :  { %v911_v50 = vpop.permute.xlu0 %910  ;;  %v931_v61 = vmul.f32 %v1099_v7, %v1656_v55  ;;  %v1101_v23 = vpop.eup %1100 }
 0x1ca   :  { %1106 = vrcp.f32 %v911_v50  ;;  %v933_v56 = vmul.f32 %v1101_v23, %v829_v27 }
 0x1cb   :  { %960 = vperm.xlu0 %1038, %v931_v61  }
 0x1cc   :  { %v1103_v0 = vpop.eup %1102 }
 0x1cd   :  { %v725_v40 = vmul.f32 %v1103_v0, %v1658_v48 }
 0x1cf   :  { %755 = vperm.xlu1 %1039, %v725_v40   ;;  %963 = vperm.xlu0 %1038, %v933_v56  }
 0x1d0   :  { %v1105_v8 = vpop.eup %1104 }
 0x1d1   :  { %v727_v6 = vmul.f32 %v1105_v8, %v624_v35 }
 0x1d3   :  { %758 = vperm.xlu1 %1039, %v727_v6  }
 0x1d4   :  { %v1107_v59 = vpop.eup %1106 }
 0x1d5   :  { %v935_v39 = vmul.f32 %v1107_v59, %v832_v34 }
 0x1d7   :  { %966 = vperm.xlu0 %1038, %v935_v39  }
 0x1f9   :  { %v738_v47 = vpop.permute.xlu0 %737 }
 0x1fa   :  { %v763_v57 = vrot.slane %v738_v47, %v1398_v19 }
 0x1fd   :  { %v741_v22 = vpop.permute.xlu0 %740  ;;  %v946_v36 = vpop.permute.xlu1 %945 }
 0x1fe   :  { %v767_v5 = vrot.slane %v741_v22, %v1398_v19  ;;  %v971_v27 = vrot.slane %v946_v36, %v1398_v19 }
 0x200   :  { %v792_v18 = vsel %vm380_vm1, %v767_v5, %v763_v57 }
 0x201   :  { %v949_v62 = vpop.permute.xlu0 %948 }
 0x202   :  { %v975_v20 = vrot.slane %v949_v62, %v1398_v19 }
 0x204   :  { %v1000_v43 = vsel %vm380_vm1, %v975_v20, %v971_v27  ;;  %vm1726_vm1 = vmmov %vm1722_vm11 }
 0x205   :  { %v744_v55 = vpop.permute.xlu1 %743  ;;  %v952_v63 = vpop.permute.xlu0 %951 }
 0x206   :  { %v771_v10 = vrot.slane %v744_v55, %v1398_v19  ;;  %v979_v25 = vrot.slane %v952_v63, %v1398_v19 }
 0x208   :  { %v793_v28 = vsel %vm382_vm2, %v771_v10, %v792_v18  ;;  %v1001_v38 = vsel %vm382_vm2, %v979_v25, %v1000_v43 }
 0x209   :  { %v747_v9 = vpop.permute.xlu1 %746 }
 0x20a   :  { %v775_v16 = vrot.slane %v747_v9, %v1398_v19 }
 0x20c   :  { %v794_v30 = vsel %vm384_vm3, %v775_v16, %v793_v28 }
 0x20d   :  { %v955_v3 = vpop.permute.xlu0 %954 }
 0x20e   :  { %v983_v31 = vrot.slane %v955_v3, %v1398_v19 }
 0x210   :  { %v1002_v51 = vsel %vm384_vm3, %v983_v31, %v1001_v38 }
 0x216   :  { %v750_v4 = vpop.permute.xlu1 %749 }
 0x217   :  { %v779_v12 = vrot.slane %v750_v4, %v1398_v19 }
 0x219   :  { %v795_v32 = vsel %vm386_vm4, %v779_v12, %v794_v30 }
 0x242   :  { %v958_v13 = vpop.permute.xlu0 %957 }
 0x243   :  { %v987_v33 = vrot.slane %v958_v13, %v1398_v19 }
 0x245   :  { %v1003_v41 = vsel %vm386_vm4, %v987_v33, %v1002_v51 }
 0x246   :  { %v753_v48 = vpop.permute.xlu1 %752 }
 0x247   :  { %v783_v24 = vrot.slane %v753_v48, %v1398_v19 }
 0x249   :  { %v796_v46 = vsel %vm388_vm5, %v783_v24, %v795_v32 }
 0x24a   :  { %v961_v60 = vpop.permute.xlu0 %960 }
 0x24b   :  { %v991_v49 = vrot.slane %v961_v60, %v1398_v19 }
 0x24d   :  { %v1004_v52 = vsel %vm388_vm5, %v991_v49, %v1003_v41 }
 0x24e   :  { %v756_v29 = vpop.permute.xlu1 %755  ;;  %v964_v17 = vpop.permute.xlu0 %963 }
 0x24f   :  { %v787_v26 = vrot.slane %v756_v29, %v1398_v19  ;;  %v995_v35 = vrot.slane %v964_v17, %v1398_v19 }
 0x251   :  { %v797_v42 = vsel %vm390_vm6, %v787_v26, %v796_v46  ;;  %v1005_v58 = vsel %vm390_vm6, %v995_v35, %v1004_v52 }
 0x252   :  { %v759_v21 = vpop.permute.xlu1 %758 }
 0x253   :  { %v791_v37 = vrot.slane %v759_v21, %v1398_v19 }
 0x255   :  { %v798_v34 = vsel %vm1722_vm11, %v791_v37, %v797_v42 }
 0x256   :  { %800 = vst.msk [vmem:[%s1717_s6] sm:$0xff] %vm397_vm10, %v798_v34  ;;  %v967_v44 = vpop.permute.xlu0 %966 }
 0x257   :  { %v999_v53 = vrot.slane %v967_v44, %v1398_v19 }
 0x259   :  { %v1006_v11 = vsel %vm1726_vm1, %v999_v53, %v1005_v58 }
 0x25a   :  { %1008 = vst.msk [vmem:[%s1718_s7] sm:$0xff] %vm397_vm10, %v1006_v11 }

</bundles_post_ra>
